<compile_context>
chip_gen: v6e
topology: v6e:2x2x1
jax: 0.10.0
libtpu: 0.0.40
codegen_flags: <defaults>
</compile_context>

<pallas_src>
import functools

import jax
import jax.numpy as jnp
from jax import lax
from jax.experimental import pallas as pl
from jax.experimental.pallas import tpu as pltpu


def _round_up(x, m):
    return (x + m - 1) // m * m


def _pad_to(a, shape):
    return jnp.pad(a, [(0, s - d) for d, s in zip(a.shape, shape)])


# ----------------------------------------------------------------------------
# Fused kernel: one (batch, output-row-tile) grid step.
#   refs = [x_padded, (expand W/scale/bias)?, dw W/scale/bias,
#           proj W/scale/bias, (residual)?, out, hidden_scratch]
# ----------------------------------------------------------------------------
def _fused_kernel(*refs, TH, TH_in, Hp, Wp, W, Wo, stride, has_expand, use_res):
    it = iter(refs)
    xpad_ref = next(it)                                   # (1, Hp, Wp, Cin_p)
    if has_expand:
        we_ref, es_ref, eb_ref = next(it), next(it), next(it)
    wd_ref, dws_ref, dwb_ref = next(it), next(it), next(it)
    wp_ref, ps_ref, pb_ref = next(it), next(it), next(it)
    res_ref = next(it) if use_res else None               # (1, TH, W, Cin_p)
    o_ref = next(it)                                      # (1, TH, Wo, Oup_p)
    h_ref = next(it)                                      # VMEM (TH_in, Wp, Hid_p)

    r = pl.program_id(1)
    row0 = pl.multiple_of(r * (TH * stride), TH * stride)  # first padded input row

    # ---- stage 1: 1x1 expand conv + BN + ReLU6, kept entirely in VMEM -------
    x_rows = xpad_ref[0, pl.ds(row0, TH_in), :, :].astype(jnp.float32)
    if has_expand:
        cin_p = x_rows.shape[-1]
        h2d = jnp.dot(x_rows.reshape(TH_in * Wp, cin_p).astype(jnp.bfloat16),
                      we_ref[...],                         # bf16 weights
                      preferred_element_type=jnp.float32)
        h2d = jnp.clip(h2d * es_ref[...] + eb_ref[...], 0.0, 6.0)
        h3d = h2d.reshape(TH_in, Wp, h2d.shape[-1])
        # Re-zero the spatial zero-padding ring (the folded BN bias made it
        # nonzero there); also zeroes the lane-alignment columns >= W+1.
        grow = row0 + lax.broadcasted_iota(jnp.int32, (TH_in, Wp, 1), 0)
        gcol = lax.broadcasted_iota(jnp.int32, (TH_in, Wp, 1), 1)
        inside = (grow >= 1) & (grow <= Hp - 2) & (gcol >= 1) & (gcol <= W)
        h3d = h3d * inside.astype(jnp.float32)
    else:
        h3d = x_rows                                       # padding already zero
    h_ref[...] = h3d

    # ---- stage 2: depthwise 3x3 + BN + ReLU6 (stride folded into the reads) -
    acc = jnp.zeros((TH, Wo, h_ref.shape[-1]), jnp.float32)
    for i in range(3):
        for j in range(3):
            if stride == 1:
                patch = h_ref[i:i + TH, j:j + Wo, :]
            else:
                patch = h_ref[pl.ds(i, TH, stride=stride),
                              pl.ds(j, Wo, stride=stride), :]
            k = i * 3 + j
            acc = acc + patch * wd_ref[k:k + 1, :]
    acc = jnp.clip(acc * dws_ref[...] + dwb_ref[...], 0.0, 6.0)

    # ---- stage 3: 1x1 project conv + BN (+ residual), lane-dense store ------
    o2d = jnp.dot(acc.reshape(TH * Wo, acc.shape[-1]).astype(jnp.bfloat16),
                  wp_ref[...],                             # bf16 weights
                  preferred_element_type=jnp.float32)
    o2d = o2d * ps_ref[...] + pb_ref[...]
    o3 = o2d.reshape(TH, Wo, o2d.shape[-1])
    if use_res:
        o3 = o3 + res_ref[0].astype(jnp.float32)
    o_ref[0] = o3.astype(o_ref.dtype)


# ----------------------------------------------------------------------------
# InvertedResidual forward (NCHW in / NCHW out), eval-mode folded BatchNorm.
# ----------------------------------------------------------------------------
def inverted_residual(x_nchw, p, stride, expand_ratio):
    assert stride in (1, 2)
    x = jnp.transpose(x_nchw, (0, 2, 3, 1)).astype(jnp.float32)   # -> NHWC
    N, H, W, Cin = x.shape
    hidden = p['dw_w'].shape[-1]
    oup = p['proj_w'].shape[-1]
    has_expand = expand_ratio != 1
    use_res = (stride == 1 and Cin == oup)

    # Channel dims padded to the 128-lane width; W padded so in-kernel reshapes
    # stay (8,128)-tile aligned.
    Cin_p, Hid_p, Oup_p = (_round_up(c, 128) for c in (Cin, hidden, oup))
    Hp = H + 2
    Wp = _round_up(W + 2, 8)
    Ho = (H - 1) // stride + 1
    Wo = (W - 1) // stride + 1

    # Output-row tile height: a divisor of Ho; 8 gives several pipelined grid
    # steps per image while keeping the 1x1 matmuls at >=128 MXU rows.
    TH = next(t for t in (8, 4, 2, 1) if Ho % t == 0)
    TH_in = (TH - 1) * stride + 3
    R = Ho // TH

    x_cp = jnp.pad(x, ((0, 0), (0, 0), (0, 0), (0, Cin_p - Cin)))        # residual
    x_sp = jnp.pad(x_cp, ((0, 0), (1, 1), (1, Wp - W - 1), (0, 0)))      # conv input

    def full(shape):
        return pl.BlockSpec(shape, lambda n, r: (0, 0))

    inputs = [x_sp]
    in_specs = [pl.BlockSpec((1, Hp, Wp, Cin_p), lambda n, r: (n, 0, 0, 0))]
    if has_expand:
        inputs += [_pad_to(p['exp_w'], (Cin_p, Hid_p)).astype(jnp.bfloat16),
                   _pad_to(p['exp_scale'], (1, Hid_p)),
                   _pad_to(p['exp_bias'], (1, Hid_p))]
        in_specs += [full((Cin_p, Hid_p)), full((1, Hid_p)), full((1, Hid_p))]
    inputs += [_pad_to(p['dw_w'], (9, Hid_p)),
               _pad_to(p['dw_scale'], (1, Hid_p)),
               _pad_to(p['dw_bias'], (1, Hid_p)),
               _pad_to(p['proj_w'], (Hid_p, Oup_p)).astype(jnp.bfloat16),
               _pad_to(p['proj_scale'], (1, Oup_p)),
               _pad_to(p['proj_bias'], (1, Oup_p))]
    in_specs += [full((9, Hid_p)), full((1, Hid_p)), full((1, Hid_p)),
                 full((Hid_p, Oup_p)), full((1, Oup_p)), full((1, Oup_p))]
    if use_res:
        inputs += [x_cp]
        in_specs += [pl.BlockSpec((1, TH, W, Cin_p), lambda n, r: (n, r, 0, 0))]

    kernel = functools.partial(_fused_kernel, TH=TH, TH_in=TH_in, Hp=Hp, Wp=Wp,
                               W=W, Wo=Wo, stride=stride,
                               has_expand=has_expand, use_res=use_res)
    out = pl.pallas_call(
        kernel,
        out_shape=jax.ShapeDtypeStruct((N, Ho, Wo, Oup_p), jnp.float32),
        grid=(N, R),
        in_specs=in_specs,
        out_specs=pl.BlockSpec((1, TH, Wo, Oup_p), lambda n, r: (n, r, 0, 0)),
        scratch_shapes=[pltpu.VMEM((TH_in, Wp, Hid_p), jnp.float32)],
        compiler_params=pltpu.CompilerParams(
            dimension_semantics=("parallel", "parallel"),
            vmem_limit_bytes=32 * 1024 * 1024),
    )(*inputs)

    out = out[..., :oup]                                   # drop lane padding
    return jnp.transpose(out, (0, 3, 1, 2))                # -> NCHW


# ----------------------------------------------------------------------------
# Parameter construction (deterministic, folded BatchNorm: eval-mode affine).
# ----------------------------------------------------------------------------
def fold_bn(gamma, beta, mean, var, eps=1e-5):
    scale = gamma / jnp.sqrt(var + eps)
    bias = beta - mean * scale
    return scale.reshape(1, -1), bias.reshape(1, -1)


def init_params(key, inp, oup, expand_ratio):
    hidden = int(round(inp * expand_ratio))
    ks = jax.random.split(key, 15)
    p = {}

    def bn(k0, k1, k2, k3, c):
        g = 1.0 + 0.1 * jax.random.normal(k0, (c,), jnp.float32)
        b = 0.1 * jax.random.normal(k1, (c,), jnp.float32)
        m = 0.1 * jax.random.normal(k2, (c,), jnp.float32)
        v = 0.5 + jnp.abs(jax.random.normal(k3, (c,), jnp.float32))
        return fold_bn(g, b, m, v)

    if expand_ratio != 1:
        p['exp_w'] = 0.2 * jax.random.normal(ks[0], (inp, hidden), jnp.float32)
        p['exp_scale'], p['exp_bias'] = bn(ks[1], ks[2], ks[3], ks[4], hidden)
    p['dw_w'] = 0.2 * jax.random.normal(ks[5], (9, hidden), jnp.float32)
    p['dw_scale'], p['dw_bias'] = bn(ks[6], ks[7], ks[8], ks[9], hidden)
    p['proj_w'] = 0.2 * jax.random.normal(ks[10], (hidden, oup), jnp.float32)
    p['proj_scale'], p['proj_bias'] = bn(ks[11], ks[12], ks[13], ks[14], oup)
    return p


# ----------------------------------------------------------------------------
# Pure-JAX reference (lax.conv) to validate the Pallas path.
# ----------------------------------------------------------------------------
def reference(x, p, stride, expand_ratio):
    dn = ('NCHW', 'OIHW', 'NCHW')
    Cin = x.shape[1]
    hidden = p['dw_w'].shape[-1]
    oup = p['proj_w'].shape[-1]
    h = x
    if expand_ratio != 1:
        w = jnp.transpose(p['exp_w'])[:, :, None, None]
        h = lax.conv_general_dilated(x, w, (1, 1), 'VALID', dimension_numbers=dn)
        h = h * p['exp_scale'].reshape(1, -1, 1, 1) + p['exp_bias'].reshape(1, -1, 1, 1)
        h = jnp.clip(h, 0.0, 6.0)
    wd = jnp.transpose(p['dw_w'].reshape(3, 3, hidden), (2, 0, 1))[:, None]
    d = lax.conv_general_dilated(h, wd, (stride, stride), ((1, 1), (1, 1)),
                                 dimension_numbers=dn, feature_group_count=hidden)
    d = d * p['dw_scale'].reshape(1, -1, 1, 1) + p['dw_bias'].reshape(1, -1, 1, 1)
    d = jnp.clip(d, 0.0, 6.0)
    wp = jnp.transpose(p['proj_w'])[:, :, None, None]
    o = lax.conv_general_dilated(d, wp, (1, 1), 'VALID', dimension_numbers=dn)
    o = o * p['proj_scale'].reshape(1, -1, 1, 1) + p['proj_bias'].reshape(1, -1, 1, 1)
    if stride == 1 and Cin == oup:
        o = o + x
    return o


if __name__ == "__main__":
    key = jax.random.PRNGKey(0)
    # (inp, oup, stride, expand_ratio, N, H, W)
    configs = [
        (8, 8, 1, 6, 2, 16, 16),     # expand conv + residual (hidden = 48)
        (16, 16, 1, 1, 2, 16, 16),   # no expand conv, residual
    ]
    # TODO(synk): the stride-2 path (in-kernel strided VMEM reads) is
    # implemented above but not exercised here.
    for idx, (inp, oup, stride, er, N, H, W) in enumerate(configs):
        kx, kp = jax.random.split(jax.random.fold_in(key, idx))
        x = jax.random.normal(kx, (N, inp, H, W), jnp.float32)
        params = init_params(kp, inp, oup, er)

        out = jax.block_until_ready(inverted_residual(x, params, stride, er))
        ref = reference(x, params, stride, er)

        assert out.shape == ref.shape == (N, oup, H, W)
        assert jnp.allclose(out, ref, rtol=5e-2, atol=5e-2), f"mismatch cfg {idx}"

    print("KERNEL_OK")
</pallas_src>

<mosaic_0001>
module attributes {stable_mosaic.version = 11 : i64} {
  func.func @_fused_kernel(%arg0: i32, %arg1: i32, %arg2: memref<1x18x24x128xf32, #tpu.memory_space<vmem>>, %arg3: memref<128x128xbf16, #tpu.memory_space<vmem>>, %arg4: memref<1x128xf32, #tpu.memory_space<vmem>>, %arg5: memref<1x128xf32, #tpu.memory_space<vmem>>, %arg6: memref<9x128xf32, #tpu.memory_space<vmem>>, %arg7: memref<1x128xf32, #tpu.memory_space<vmem>>, %arg8: memref<1x128xf32, #tpu.memory_space<vmem>>, %arg9: memref<128x128xbf16, #tpu.memory_space<vmem>>, %arg10: memref<1x128xf32, #tpu.memory_space<vmem>>, %arg11: memref<1x128xf32, #tpu.memory_space<vmem>>, %arg12: memref<1x8x16x128xf32, #tpu.memory_space<vmem>>, %arg13: memref<1x8x16x128xf32, #tpu.memory_space<vmem>>, %arg14: memref<10x24x128xf32, #tpu.memory_space<vmem>>) attributes {dimension_semantics = [#tpu.dimension_semantics<parallel>, #tpu.dimension_semantics<parallel>], iteration_bounds = array<i64: 2, 2>, scalar_prefetch = 0 : i64, scratch_operands = 1 : i64, tpu.core_type = #tpu.core_type<tc>, window_params = [{transform_indices = @transform_0, window_bounds = array<i64: 1, 18, 24, 128>}, {pipeline_mode = #tpu.pipeline_mode<synchronous>, transform_indices = @transform_1, window_bounds = array<i64: 128, 128>}, {pipeline_mode = #tpu.pipeline_mode<synchronous>, transform_indices = @transform_2, window_bounds = array<i64: 1, 128>}, {pipeline_mode = #tpu.pipeline_mode<synchronous>, transform_indices = @transform_3, window_bounds = array<i64: 1, 128>}, {pipeline_mode = #tpu.pipeline_mode<synchronous>, transform_indices = @transform_4, window_bounds = array<i64: 9, 128>}, {pipeline_mode = #tpu.pipeline_mode<synchronous>, transform_indices = @transform_5, window_bounds = array<i64: 1, 128>}, {pipeline_mode = #tpu.pipeline_mode<synchronous>, transform_indices = @transform_6, window_bounds = array<i64: 1, 128>}, {pipeline_mode = #tpu.pipeline_mode<synchronous>, transform_indices = @transform_7, window_bounds = array<i64: 128, 128>}, {pipeline_mode = #tpu.pipeline_mode<synchronous>, transform_indices = @transform_8, window_bounds = array<i64: 1, 128>}, {pipeline_mode = #tpu.pipeline_mode<synchronous>, transform_indices = @transform_9, window_bounds = array<i64: 1, 128>}, {transform_indices = @transform_10, window_bounds = array<i64: 1, 8, 16, 128>}, {transform_indices = @transform_11, window_bounds = array<i64: 1, 8, 16, 128>}]} {
    %c8_i32 = arith.constant 8 : i32
    %0 = arith.muli %arg1, %c8_i32 : i32
    %1 = tpu.assume_multiple %0, 8 : i32
    %c0 = arith.constant 0 : index
    %2 = arith.index_cast %1 : i32 to index
    %c0_0 = arith.constant 0 : index
    %c0_1 = arith.constant 0 : index
    %3 = vector.load %arg2[%c0, %2, %c0_0, %c0_1] : memref<1x18x24x128xf32, #tpu.memory_space<vmem>>, vector<1x10x24x128xf32>
    %4 = vector.shape_cast %3 : vector<1x10x24x128xf32> to vector<10x24x128xf32>
    %5 = vector.shape_cast %4 : vector<10x24x128xf32> to vector<240x128xf32>
    %6 = arith.truncf %5 : vector<240x128xf32> to vector<240x128xbf16>
    %c0_2 = arith.constant 0 : index
    %c0_3 = arith.constant 0 : index
    %7 = vector.load %arg3[%c0_2, %c0_3] : memref<128x128xbf16, #tpu.memory_space<vmem>>, vector<128x128xbf16>
    %cst = arith.constant dense<0.000000e+00> : vector<240x128xf32>
    %8 = tpu.matmul %6, %7, %cst {dimension_numbers = #tpu.dot_dimension_numbers<[1], [0], [0], [1], [0, 0, 1, 1], [], []>} : vector<240x128xbf16>, vector<128x128xbf16>, vector<240x128xf32> -> vector<240x128xf32>
    %c0_4 = arith.constant 0 : index
    %c0_5 = arith.constant 0 : index
    %9 = vector.load %arg4[%c0_4, %c0_5] : memref<1x128xf32, #tpu.memory_space<vmem>>, vector<1x128xf32>
    %10 = vector.broadcast %9 : vector<1x128xf32> to vector<240x128xf32>
    %11 = arith.mulf %8, %10 : vector<240x128xf32>
    %c0_6 = arith.constant 0 : index
    %c0_7 = arith.constant 0 : index
    %12 = vector.load %arg5[%c0_6, %c0_7] : memref<1x128xf32, #tpu.memory_space<vmem>>, vector<1x128xf32>
    %13 = vector.broadcast %12 : vector<1x128xf32> to vector<240x128xf32>
    %14 = arith.addf %11, %13 : vector<240x128xf32>
    %cst_8 = arith.constant 0.000000e+00 : f32
    %cst_9 = arith.constant 6.000000e+00 : f32
    %15 = vector.broadcast %cst_8 : f32 to vector<240x128xf32>
    %16 = arith.maximumf %15, %14 : vector<240x128xf32>
    %17 = vector.broadcast %cst_9 : f32 to vector<240x128xf32>
    %18 = arith.minimumf %17, %16 : vector<240x128xf32>
    %19 = vector.shape_cast %18 : vector<240x128xf32> to vector<10x24x128xf32>
    %20 = tpu.iota {dimensions = array<i32: 0>} : vector<10x24x1xi32>
    %21 = vector.broadcast %1 : i32 to vector<10x24x1xi32>
    %22 = arith.addi %21, %20 : vector<10x24x1xi32>
    %23 = tpu.iota {dimensions = array<i32: 1>} : vector<10x24x1xi32>
    %c1_i32 = arith.constant 1 : i32
    %24 = vector.broadcast %c1_i32 : i32 to vector<10x24x1xi32>
    %25 = arith.cmpi sge, %22, %24 : vector<10x24x1xi32>
    %c16_i32 = arith.constant 16 : i32
    %26 = vector.broadcast %c16_i32 : i32 to vector<10x24x1xi32>
    %27 = arith.cmpi sle, %22, %26 : vector<10x24x1xi32>
    %28 = arith.andi %25, %27 : vector<10x24x1xi1>
    %c1_i32_10 = arith.constant 1 : i32
    %29 = vector.broadcast %c1_i32_10 : i32 to vector<10x24x1xi32>
    %30 = arith.cmpi sge, %23, %29 : vector<10x24x1xi32>
    %31 = arith.andi %28, %30 : vector<10x24x1xi1>
    %c16_i32_11 = arith.constant 16 : i32
    %32 = vector.broadcast %c16_i32_11 : i32 to vector<10x24x1xi32>
    %33 = arith.cmpi sle, %23, %32 : vector<10x24x1xi32>
    %34 = arith.andi %31, %33 : vector<10x24x1xi1>
    %35 = arith.extui %34 : vector<10x24x1xi1> to vector<10x24x1xi32>
    %36 = arith.sitofp %35 : vector<10x24x1xi32> to vector<10x24x1xf32>
    %37 = vector.broadcast %36 : vector<10x24x1xf32> to vector<10x24x128xf32>
    %38 = arith.mulf %19, %37 : vector<10x24x128xf32>
    %c0_12 = arith.constant 0 : index
    %c0_13 = arith.constant 0 : index
    %c0_14 = arith.constant 0 : index
    %39 = vector.load %arg14[%c0_12, %c0_13, %c0_14] : memref<10x24x128xf32, #tpu.memory_space<vmem>>, vector<10x24x128xf32>
    tpu.vector_store %arg14[%c0_12, %c0_13, %c0_14], %38 {strides = array<i32>} : memref<10x24x128xf32, #tpu.memory_space<vmem>>, vector<10x24x128xf32>,
    %cst_15 = arith.constant 0.000000e+00 : f32
    %40 = vector.broadcast %cst_15 : f32 to vector<8x16x128xf32>
    %c0_16 = arith.constant 0 : index
    %c0_17 = arith.constant 0 : index
    %c0_18 = arith.constant 0 : index
    %41 = vector.load %arg14[%c0_16, %c0_17, %c0_18] : memref<10x24x128xf32, #tpu.memory_space<vmem>>, vector<8x16x128xf32>
    %c0_19 = arith.constant 0 : index
    %c0_20 = arith.constant 0 : index
    %42 = vector.load %arg6[%c0_19, %c0_20] : memref<9x128xf32, #tpu.memory_space<vmem>>, vector<1x128xf32>
    %43 = vector.shape_cast %42 : vector<1x128xf32> to vector<1x1x128xf32>
    %44 = vector.broadcast %43 : vector<1x1x128xf32> to vector<8x16x128xf32>
    %45 = arith.mulf %41, %44 : vector<8x16x128xf32>
    %46 = arith.addf %40, %45 : vector<8x16x128xf32>
    %c0_21 = arith.constant 0 : index
    %c1 = arith.constant 1 : index
    %c0_22 = arith.constant 0 : index
    %47 = vector.load %arg14[%c0_21, %c1, %c0_22] : memref<10x24x128xf32, #tpu.memory_space<vmem>>, vector<8x16x128xf32>
    %c1_23 = arith.constant 1 : index
    %c0_24 = arith.constant 0 : index
    %48 = vector.load %arg6[%c1_23, %c0_24] : memref<9x128xf32, #tpu.memory_space<vmem>>, vector<1x128xf32>
    %49 = vector.shape_cast %48 : vector<1x128xf32> to vector<1x1x128xf32>
    %50 = vector.broadcast %49 : vector<1x1x128xf32> to vector<8x16x128xf32>
    %51 = arith.mulf %47, %50 : vector<8x16x128xf32>
    %52 = arith.addf %46, %51 : vector<8x16x128xf32>
    %c0_25 = arith.constant 0 : index
    %c2 = arith.constant 2 : index
    %c0_26 = arith.constant 0 : index
    %53 = vector.load %arg14[%c0_25, %c2, %c0_26] : memref<10x24x128xf32, #tpu.memory_space<vmem>>, vector<8x16x128xf32>
    %c2_27 = arith.constant 2 : index
    %c0_28 = arith.constant 0 : index
    %54 = vector.load %arg6[%c2_27, %c0_28] : memref<9x128xf32, #tpu.memory_space<vmem>>, vector<1x128xf32>
    %55 = vector.shape_cast %54 : vector<1x128xf32> to vector<1x1x128xf32>
    %56 = vector.broadcast %55 : vector<1x1x128xf32> to vector<8x16x128xf32>
    %57 = arith.mulf %53, %56 : vector<8x16x128xf32>
    %58 = arith.addf %52, %57 : vector<8x16x128xf32>
    %c1_29 = arith.constant 1 : index
    %c0_30 = arith.constant 0 : index
    %c0_31 = arith.constant 0 : index
    %59 = vector.load %arg14[%c1_29, %c0_30, %c0_31] : memref<10x24x128xf32, #tpu.memory_space<vmem>>, vector<8x16x128xf32>
    %c3 = arith.constant 3 : index
    %c0_32 = arith.constant 0 : index
    %60 = vector.load %arg6[%c3, %c0_32] : memref<9x128xf32, #tpu.memory_space<vmem>>, vector<1x128xf32>
    %61 = vector.shape_cast %60 : vector<1x128xf32> to vector<1x1x128xf32>
    %62 = vector.broadcast %61 : vector<1x1x128xf32> to vector<8x16x128xf32>
    %63 = arith.mulf %59, %62 : vector<8x16x128xf32>
    %64 = arith.addf %58, %63 : vector<8x16x128xf32>
    %c1_33 = arith.constant 1 : index
    %c1_34 = arith.constant 1 : index
    %c0_35 = arith.constant 0 : index
    %65 = vector.load %arg14[%c1_33, %c1_34, %c0_35] : memref<10x24x128xf32, #tpu.memory_space<vmem>>, vector<8x16x128xf32>
    %c4 = arith.constant 4 : index
    %c0_36 = arith.constant 0 : index
    %66 = vector.load %arg6[%c4, %c0_36] : memref<9x128xf32, #tpu.memory_space<vmem>>, vector<1x128xf32>
    %67 = vector.shape_cast %66 : vector<1x128xf32> to vector<1x1x128xf32>
    %68 = vector.broadcast %67 : vector<1x1x128xf32> to vector<8x16x128xf32>
    %69 = arith.mulf %65, %68 : vector<8x16x128xf32>
    %70 = arith.addf %64, %69 : vector<8x16x128xf32>
    %c1_37 = arith.constant 1 : index
    %c2_38 = arith.constant 2 : index
    %c0_39 = arith.constant 0 : index
    %71 = vector.load %arg14[%c1_37, %c2_38, %c0_39] : memref<10x24x128xf32, #tpu.memory_space<vmem>>, vector<8x16x128xf32>
    %c5 = arith.constant 5 : index
    %c0_40 = arith.constant 0 : index
    %72 = vector.load %arg6[%c5, %c0_40] : memref<9x128xf32, #tpu.memory_space<vmem>>, vector<1x128xf32>
    %73 = vector.shape_cast %72 : vector<1x128xf32> to vector<1x1x128xf32>
    %74 = vector.broadcast %73 : vector<1x1x128xf32> to vector<8x16x128xf32>
    %75 = arith.mulf %71, %74 : vector<8x16x128xf32>
    %76 = arith.addf %70, %75 : vector<8x16x128xf32>
    %c2_41 = arith.constant 2 : index
    %c0_42 = arith.constant 0 : index
    %c0_43 = arith.constant 0 : index
    %77 = vector.load %arg14[%c2_41, %c0_42, %c0_43] : memref<10x24x128xf32, #tpu.memory_space<vmem>>, vector<8x16x128xf32>
    %c6 = arith.constant 6 : index
    %c0_44 = arith.constant 0 : index
    %78 = vector.load %arg6[%c6, %c0_44] : memref<9x128xf32, #tpu.memory_space<vmem>>, vector<1x128xf32>
    %79 = vector.shape_cast %78 : vector<1x128xf32> to vector<1x1x128xf32>
    %80 = vector.broadcast %79 : vector<1x1x128xf32> to vector<8x16x128xf32>
    %81 = arith.mulf %77, %80 : vector<8x16x128xf32>
    %82 = arith.addf %76, %81 : vector<8x16x128xf32>
    %c2_45 = arith.constant 2 : index
    %c1_46 = arith.constant 1 : index
    %c0_47 = arith.constant 0 : index
    %83 = vector.load %arg14[%c2_45, %c1_46, %c0_47] : memref<10x24x128xf32, #tpu.memory_space<vmem>>, vector<8x16x128xf32>
    %c7 = arith.constant 7 : index
    %c0_48 = arith.constant 0 : index
    %84 = vector.load %arg6[%c7, %c0_48] : memref<9x128xf32, #tpu.memory_space<vmem>>, vector<1x128xf32>
    %85 = vector.shape_cast %84 : vector<1x128xf32> to vector<1x1x128xf32>
    %86 = vector.broadcast %85 : vector<1x1x128xf32> to vector<8x16x128xf32>
    %87 = arith.mulf %83, %86 : vector<8x16x128xf32>
    %88 = arith.addf %82, %87 : vector<8x16x128xf32>
    %c2_49 = arith.constant 2 : index
    %c2_50 = arith.constant 2 : index
    %c0_51 = arith.constant 0 : index
    %89 = vector.load %arg14[%c2_49, %c2_50, %c0_51] : memref<10x24x128xf32, #tpu.memory_space<vmem>>, vector<8x16x128xf32>
    %c8 = arith.constant 8 : index
    %c0_52 = arith.constant 0 : index
    %90 = vector.load %arg6[%c8, %c0_52] : memref<9x128xf32, #tpu.memory_space<vmem>>, vector<1x128xf32>
    %91 = vector.shape_cast %90 : vector<1x128xf32> to vector<1x1x128xf32>
    %92 = vector.broadcast %91 : vector<1x1x128xf32> to vector<8x16x128xf32>
    %93 = arith.mulf %89, %92 : vector<8x16x128xf32>
    %94 = arith.addf %88, %93 : vector<8x16x128xf32>
    %c0_53 = arith.constant 0 : index
    %c0_54 = arith.constant 0 : index
    %95 = vector.load %arg7[%c0_53, %c0_54] : memref<1x128xf32, #tpu.memory_space<vmem>>, vector<1x128xf32>
    %96 = vector.shape_cast %95 : vector<1x128xf32> to vector<1x1x128xf32>
    %97 = vector.broadcast %96 : vector<1x1x128xf32> to vector<8x16x128xf32>
    %98 = arith.mulf %94, %97 : vector<8x16x128xf32>
    %c0_55 = arith.constant 0 : index
    %c0_56 = arith.constant 0 : index
    %99 = vector.load %arg8[%c0_55, %c0_56] : memref<1x128xf32, #tpu.memory_space<vmem>>, vector<1x128xf32>
    %100 = vector.shape_cast %99 : vector<1x128xf32> to vector<1x1x128xf32>
    %101 = vector.broadcast %100 : vector<1x1x128xf32> to vector<8x16x128xf32>
    %102 = arith.addf %98, %101 : vector<8x16x128xf32>
    %cst_57 = arith.constant 0.000000e+00 : f32
    %cst_58 = arith.constant 6.000000e+00 : f32
    %103 = vector.broadcast %cst_57 : f32 to vector<8x16x128xf32>
    %104 = arith.maximumf %103, %102 : vector<8x16x128xf32>
    %105 = vector.broadcast %cst_58 : f32 to vector<8x16x128xf32>
    %106 = arith.minimumf %105, %104 : vector<8x16x128xf32>
    %107 = vector.shape_cast %106 : vector<8x16x128xf32> to vector<128x128xf32>
    %108 = arith.truncf %107 : vector<128x128xf32> to vector<128x128xbf16>
    %c0_59 = arith.constant 0 : index
    %c0_60 = arith.constant 0 : index
    %109 = vector.load %arg9[%c0_59, %c0_60] : memref<128x128xbf16, #tpu.memory_space<vmem>>, vector<128x128xbf16>
    %cst_61 = arith.constant dense<0.000000e+00> : vector<128x128xf32>
    %110 = tpu.matmul %108, %109, %cst_61 {dimension_numbers = #tpu.dot_dimension_numbers<[1], [0], [0], [1], [0, 0, 1, 1], [], []>} : vector<128x128xbf16>, vector<128x128xbf16>, vector<128x128xf32> -> vector<128x128xf32>
    %c0_62 = arith.constant 0 : index
    %c0_63 = arith.constant 0 : index
    %111 = vector.load %arg10[%c0_62, %c0_63] : memref<1x128xf32, #tpu.memory_space<vmem>>, vector<1x128xf32>
    %112 = vector.broadcast %111 : vector<1x128xf32> to vector<128x128xf32>
    %113 = arith.mulf %110, %112 : vector<128x128xf32>
    %c0_64 = arith.constant 0 : index
    %c0_65 = arith.constant 0 : index
    %114 = vector.load %arg11[%c0_64, %c0_65] : memref<1x128xf32, #tpu.memory_space<vmem>>, vector<1x128xf32>
    %115 = vector.broadcast %114 : vector<1x128xf32> to vector<128x128xf32>
    %116 = arith.addf %113, %115 : vector<128x128xf32>
    %117 = vector.shape_cast %116 : vector<128x128xf32> to vector<8x16x128xf32>
    %c0_66 = arith.constant 0 : index
    %c0_67 = arith.constant 0 : index
    %c0_68 = arith.constant 0 : index
    %c0_69 = arith.constant 0 : index
    %118 = vector.load %arg12[%c0_66, %c0_67, %c0_68, %c0_69] : memref<1x8x16x128xf32, #tpu.memory_space<vmem>>, vector<1x8x16x128xf32>
    %119 = vector.shape_cast %118 : vector<1x8x16x128xf32> to vector<8x16x128xf32>
    %120 = arith.addf %117, %119 : vector<8x16x128xf32>
    %c0_70 = arith.constant 0 : index
    %c0_71 = arith.constant 0 : index
    %c0_72 = arith.constant 0 : index
    %c0_73 = arith.constant 0 : index
    %121 = vector.load %arg13[%c0_70, %c0_71, %c0_72, %c0_73] : memref<1x8x16x128xf32, #tpu.memory_space<vmem>>, vector<1x8x16x128xf32>
    %122 = vector.shape_cast %121 : vector<1x8x16x128xf32> to vector<8x16x128xf32>
    %123 = vector.shape_cast %120 : vector<8x16x128xf32> to vector<1x8x16x128xf32>
    tpu.vector_store %arg13[%c0_70, %c0_71, %c0_72, %c0_73], %123 {strides = array<i32>} : memref<1x8x16x128xf32, #tpu.memory_space<vmem>>, vector<1x8x16x128xf32>,
    return
  }
  func.func @transform_0(%arg0: i32, %arg1: i32) -> (i32, i32, i32, i32) {
    %c0_i32 = arith.constant 0 : i32
    %c0_i32_0 = arith.constant 0 : i32
    %c0_i32_1 = arith.constant 0 : i32
    %c0_i32_2 = arith.constant 0 : i32
    return %arg0, %c0_i32, %c0_i32_0, %c0_i32_1 : i32, i32, i32, i32
  }
  func.func @transform_1(%arg0: i32, %arg1: i32) -> (i32, i32) {
    %c0_i32 = arith.constant 0 : i32
    %c0_i32_0 = arith.constant 0 : i32
    %c0_i32_1 = arith.constant 0 : i32
    return %c0_i32, %c0_i32_0 : i32, i32
  }
  func.func @transform_2(%arg0: i32, %arg1: i32) -> (i32, i32) {
    %c0_i32 = arith.constant 0 : i32
    %c0_i32_0 = arith.constant 0 : i32
    %c0_i32_1 = arith.constant 0 : i32
    return %c0_i32, %c0_i32_0 : i32, i32
  }
  func.func @transform_3(%arg0: i32, %arg1: i32) -> (i32, i32) {
    %c0_i32 = arith.constant 0 : i32
    %c0_i32_0 = arith.constant 0 : i32
    %c0_i32_1 = arith.constant 0 : i32
    return %c0_i32, %c0_i32_0 : i32, i32
  }
  func.func @transform_4(%arg0: i32, %arg1: i32) -> (i32, i32) {
    %c0_i32 = arith.constant 0 : i32
    %c0_i32_0 = arith.constant 0 : i32
    %c0_i32_1 = arith.constant 0 : i32
    return %c0_i32, %c0_i32_0 : i32, i32
  }
  func.func @transform_5(%arg0: i32, %arg1: i32) -> (i32, i32) {
    %c0_i32 = arith.constant 0 : i32
    %c0_i32_0 = arith.constant 0 : i32
    %c0_i32_1 = arith.constant 0 : i32
    return %c0_i32, %c0_i32_0 : i32, i32
  }
  func.func @transform_6(%arg0: i32, %arg1: i32) -> (i32, i32) {
    %c0_i32 = arith.constant 0 : i32
    %c0_i32_0 = arith.constant 0 : i32
    %c0_i32_1 = arith.constant 0 : i32
    return %c0_i32, %c0_i32_0 : i32, i32
  }
  func.func @transform_7(%arg0: i32, %arg1: i32) -> (i32, i32) {
    %c0_i32 = arith.constant 0 : i32
    %c0_i32_0 = arith.constant 0 : i32
    %c0_i32_1 = arith.constant 0 : i32
    return %c0_i32, %c0_i32_0 : i32, i32
  }
  func.func @transform_8(%arg0: i32, %arg1: i32) -> (i32, i32) {
    %c0_i32 = arith.constant 0 : i32
    %c0_i32_0 = arith.constant 0 : i32
    %c0_i32_1 = arith.constant 0 : i32
    return %c0_i32, %c0_i32_0 : i32, i32
  }
  func.func @transform_9(%arg0: i32, %arg1: i32) -> (i32, i32) {
    %c0_i32 = arith.constant 0 : i32
    %c0_i32_0 = arith.constant 0 : i32
    %c0_i32_1 = arith.constant 0 : i32
    return %c0_i32, %c0_i32_0 : i32, i32
  }
  func.func @transform_10(%arg0: i32, %arg1: i32) -> (i32, i32, i32, i32) {
    %c0_i32 = arith.constant 0 : i32
    %c0_i32_0 = arith.constant 0 : i32
    %c0_i32_1 = arith.constant 0 : i32
    return %arg0, %arg1, %c0_i32, %c0_i32_0 : i32, i32, i32, i32
  }
  func.func @transform_11(%arg0: i32, %arg1: i32) -> (i32, i32, i32, i32) {
    %c0_i32 = arith.constant 0 : i32
    %c0_i32_0 = arith.constant 0 : i32
    %c0_i32_1 = arith.constant 0 : i32
    return %arg0, %arg1, %c0_i32, %c0_i32_0 : i32, i32, i32, i32
  }
}

</mosaic_0001>

<bundles_post_ra>
// kernel: tpu_custom_call.1
= control target key start
LH: loop header
LB: loop body
LE: loop exit
PB: predicated region body
PF: predicated region fallthrough
CT: control target
= control target key end

     0   :  { %s4167_s0 = inlined_call_operand.hbm [shape: f32[2,18,24,128], index: 0, kind: input, shape index: {}]   ;;  %s4168_s1 = inlined_call_operand.hbm [shape: bf16[128,128], index: 1, kind: input, shape index: {}]   ;;  %s4169_s2 = inlined_call_operand.vmem [shape: f32[1,128], index: 2, kind: input, shape index: {}]   ;;  %s4170_s3 = inlined_call_operand.vmem [shape: f32[1,128], index: 3, kind: input, shape index: {}]   ;;  %s4171_s4 = inlined_call_operand.hbm [shape: f32[9,128], index: 4, kind: input, shape index: {}]   ;;  %s4172_s5 = inlined_call_operand.vmem [shape: f32[1,128], index: 5, kind: input, shape index: {}]   ;;  %s4173_s6 = inlined_call_operand.vmem [shape: f32[1,128], index: 6, kind: input, shape index: {}]   ;;  %s4174_s7 = inlined_call_operand.hbm [shape: bf16[128,128], index: 7, kind: input, shape index: {}]   ;;  %s4175_s8 = inlined_call_operand.vmem [shape: f32[1,128], index: 8, kind: input, shape index: {}]   ;;  %s4176_s9 = inlined_call_operand.vmem [shape: f32[1,128], index: 9, kind: input, shape index: {}]   ;;  %s4177_s10 = inlined_call_operand.hbm [shape: f32[2,16,16,128], index: 10, kind: input, shape index: {}]   ;;  %s4178_s11 = inlined_call_operand.hbm [shape: f32[2,16,16,128], index: 11, kind: output, shape index: {}]  }
   0x1   :  { %4200 = sst [smem:[#allocation25_spill]] %s4167_s0 }
   0x2   :  { %4201 = sst [smem:[#allocation26_spill]] %s4168_s1 }
   0x3   :  { %4202 = sst [smem:[#allocation27_spill]] %s4169_s2 }
   0x4   :  { %4203 = sst [smem:[#allocation28_spill]] %s4170_s3 }
   0x5   :  { %4204 = sst [smem:[#allocation29_spill]] %s4171_s4 }
   0x6   :  { %4205 = sst [smem:[#allocation30_spill]] %s4172_s5 }
   0x7   :  { %4206 = sst [smem:[#allocation31_spill]] %s4173_s6 }
   0x8   :  { %4207 = sst [smem:[#allocation32_spill]] %s4174_s7 }
   0x9   :  { %4208 = sst [smem:[#allocation33_spill]] %s4175_s8 }
   0xa   :  { %4209 = sst [smem:[#allocation34_spill]] %s4176_s9 }
   0xb   :  { %4210 = sst [smem:[#allocation35_spill]] %s4178_s11 }
   0xc   :  { %16 = vsyncpa [#allocation4], 0 }
   0xd   :  { %18 = vsyncpa [#allocation4 + $0x1], 0 }
   0xe   :  { %19 = vsyncpa [#allocation7], 0 }
   0xf   :  { %20 = vsyncpa [#allocation10], 0 }
  0x10   :  { %21 = vsyncpa [#allocation5], 0 }
  0x11   :  { %23 = vsyncpa [#allocation5 + $0x1], 0  ;;  %s2881_s17 = smov 0   ;;  %s2883_s18 = smov 0  }
  0x12   :  { %s2885_s19 = smov 0   ;;  %s2887_s20 = smov 0  }
  0x13   :  { %s2889_s21 = smov 0   ;;  %s2891_s22 = smov 0  }
  0x14   :  { %s2893_s23 = smov 0   ;;  %s2895_s24 = smov 0  }
  0x15   :  { %s2897_s25 = smov 0   ;;  %s2899_s26 = smov 0  }
  0x16   :  { %s2901_s27 = smov 0  }
  0x17 LB: > { %4211 = sst [smem:[#allocation18_spill]] %s2765_s17  ;;  %s2935_s28 = sadd.s32 4294967295, %s2805_s27   ;;  %s2805_s27 = sphi %s2901_s27, %s29_s27   ;;  %s2801_s26 = sphi %s2899_s26, %s4347_s26   ;;  %s2797_s25 = sphi %s2897_s25, %s4339_s25   ;;  %s2793_s24 = sphi %s2895_s24, %s4346_s24   ;;  %s2789_s23 = sphi %s2893_s23, %s4338_s23   ;;  %s2785_s22 = sphi %s2891_s22, %s4345_s22   ;;  %s2781_s21 = sphi %s2889_s21, %s4344_s21   ;;  %s2777_s20 = sphi %s2887_s20, %s4343_s20   ;;  %s2773_s19 = sphi %s2885_s19, %s4342_s19   ;;  %s2769_s18 = sphi %s2883_s18, %s4341_s18   ;;  %s2765_s17 = sphi %s2881_s17, %s4340_s17  }
  0x18   : > { %4212 = sst [smem:[#allocation19_spill]] %s2789_s23  ;;  %s2116_s29 = sadd.s32 4294967294, %s2805_s27  }
  0x19   : > { %4213 = sst [smem:[#allocation20_spill]] %s2793_s24  ;;  %p61_p0 = scmp.ne.s32.totalorder %s2781_s21, %s2777_s20 }
  0x1a   : > { %4214 = sst [smem:[#allocation21_spill]] %s2797_s25  ;;  %p4187_p1 = scmp.eq.s32.totalorder %s2935_s28, 0 }
  0x1b   : > { %p278_p2 = scmp.ne.s32.totalorder %s2769_s18, %s2765_s17  ;;  %p310_p5 = scmp.eq.s32.totalorder %s2116_s29, 3 }
  0x1c   : > { %p2945_p4 = por %p4187_p1, %p61_p0  ;;  %p2117_p7 = scmp.ge.s32.totalorder %s2805_s27, 1 }
  0x1d   : > { %p2951_p6 = por %p278_p2, %p4187_p1  ;;  %p2956_p8 = por %p310_p5, %p278_p2 }
  0x1e   : > { %p317_p9 = scmp.lt.s32.totalorder %s2805_s27, 5  ;;  %s2807_s15 = smov [#allocation6]  }
  0x1f   : > { %s4216_s12 = scalar_select %p2951_p6, 1, 0 }
  0x20   : > { %s4218_s13 = scalar_select %p2956_p8, 1, 0 }
  0x21   : > { %4217 = sst [smem:[#allocation22_spill]] %s4216_s12  ;;  %p2961_p10 = pnand %p2117_p7, %p317_p9 }
  0x22   : > { %4219 = sst [smem:[#allocation23_spill]] %s4218_s13  ;;  %s329_s16 = sshll.u32 %s2807_s15, 4  ;;  %s330_s16 = int_to_ptr.vmem [resolvable:$true] %s329_s16 }
  0x23   : > { %p2390_p11 = pneg %p2961_p10  ;;  %s2550_s13 = scalar_lea.vmem %s330_s16, 1024 }
  0x24   : > { %p2551_p0 = scmp.ne.s32.totalorder %s330_s16, %s2550_s13  ;;  %p2558_p7 = scmp.lt.s32.totalorder %s330_s16, %s330_s16 }
  0x25   : > { %p2969_p12 = pnand %p2390_p11, %p4187_p1  ;;  %p2559_p9 = scmp.lt.s32.totalorder %s2550_s13, %s2550_s13 }
  0x27   : > { %p2541_p13 = pneg %p2969_p12  ;;  %p2560_p3 = por %p2559_p9, %p2558_p7 }
  0x29   : > { %p2553_p2 = pnand %p2551_p0, %p2541_p13 }
  0x2b   : > { %p2554_p5 = pneg %p2553_p2 }
  0x2d   : > { %p2561_p8 = pnand %p2560_p3, %p2554_p5 }
  0x2f   : > { %2564 = shalt.err (!%p2561_p8)
}
  0x30   : > { %s4182_s15 = smov 64   ;;  %s4183_s29 = smov 4  }
  0x31   : > { %s4222_s1 = sld [smem:[#allocation26_spill]]  ;;  %p55_p3 = scmp.ne.s32.totalorder %s2785_s22, %s2781_s21 }
  0x32   : > { %p4189_p8 = scmp.eq.s32.totalorder %s2805_s27, 0  ;;  %p4188_p11 = scmp.lt.s32.totalorder %s2805_s27, 4 }
  0x33   : > { %s387_s24 = sand.u32 1, %s2805_s27   ;;  %s389_s9 = sand.u32 1, %s2785_s22  }
  0x34   : > { %p57_p0 = por %p4189_p8, %p55_p3  ;;  %s2369_s8 = smul.u32 432, %s389_s9 }
  0x35   : > { %s2370_s5 = smul.u32 6912, %s2801_s26  ;;  %s4224_s0 = sld [smem:[#allocation25_spill]] }
  0x36   : > { %p2998_p2 = pnand %p4188_p11, %p57_p0  ;;  %s2810_s11 = smov [#allocation8]  }
  0x37   : > { %2393 = dma.hbm_to_vmem [thread:$0]  (!%p2969_p12), %s4222_s1, 1024, %s330_s16, [#allocation7], %s4182_s15, %s4182_s15, %s4183_s29  }
  0x38   : > { %s391_s16 = scalar_lea.vmem [#allocation3], %s2369_s8  ;;  %s348_s15 = sshll.u32 %s2810_s11, 4  ;;  %s349_s15 = int_to_ptr.vmem [resolvable:$true] %s348_s15 }
  0x39   : > { %s398_s13 = sshll.u32 %s391_s16, 4  ;;  %s3006_s29 = scalar_lea.sflag [#allocation4], %s387_s24  ;;  %s399_s13 = int_to_ptr.vmem [resolvable:$true] %s398_s13 }
  0x3a   : > { %p2567_p5 = pneg %p2998_p2  ;;  %s2578_s9 = scalar_lea.vmem %s399_s13, 6912 }
  0x3b   : > { %s397_s17 = scalar_lea.hbm %s4224_s0, %s2370_s5  ;;  %p2579_p7 = scmp.ne.s32.totalorder %s399_s13, %s2578_s9 }
  0x3c   : > { %s2811_s1 = smov [#allocation3]  }
  0x3d   : > { %p2581_p9 = pnand %p2579_p7, %p2567_p5  ;;  %s2583_s23 = sshll.u32 %s2811_s1, 4  ;;  %s2584_s23 = int_to_ptr.vmem [resolvable:$false] %s2583_s23 }
  0x3e   : > { %s2585_s12 = scalar_lea.vmem %s2584_s23, 13824  ;;  %p2586_p0 = scmp.lt.s32.totalorder %s399_s13, %s2584_s23 }
  0x3f   : > { %p2582_p3 = pneg %p2581_p9  ;;  %p2587_p1 = scmp.lt.s32.totalorder %s2585_s12, %s2578_s9 }
  0x41   : > { %p2588_p11 = por %p2587_p1, %p2586_p0 }
  0x43   : > { %p2589_p8 = pnand %p2588_p11, %p2582_p3 }
  0x45   : > { %2592 = shalt.err (!%p2589_p8)
}
  0x46   : > { %s4190_s2 = smov 128   ;;  %s4191_s3 = smov 8  }
  0x47   : > { %2403 = dma.hbm_to_vmem [thread:$0]  (!%p2998_p2), %s397_s17, 6912, %s399_s13, %s3006_s29, %s4190_s2, %s4190_s2, %s4191_s3  }
  0x48   : > { %s2604_s5 = scalar_lea.vmem %s349_s15, 256  ;;  %p2612_p1 = scmp.lt.s32.totalorder %s349_s15, %s349_s15 }
  0x49   : > { %p2605_p5 = scmp.ne.s32.totalorder %s349_s15, %s2604_s5  ;;  %p2613_p11 = scmp.lt.s32.totalorder %s2604_s5, %s2604_s5 }
  0x4b   : > { %p2607_p7 = pnand %p2605_p5, %p2541_p13  ;;  %p2614_p8 = por %p2613_p11, %p2612_p1 }
  0x4d   : > { %p2608_p9 = pneg %p2607_p7 }
  0x4f   : > { %p2615_p3 = pnand %p2614_p8, %p2608_p9 }
  0x51   : > { %2618 = shalt.err (!%p2615_p3)
}
  0x52   : > { %s4225_s4 = sld [smem:[#allocation29_spill]]  ;;  %s2814_s8 = smov [#allocation9]  }
  0x53   : > { %s367_s11 = sshll.u32 %s2814_s8, 4  ;;  %s368_s11 = int_to_ptr.vmem [resolvable:$true] %s367_s11 }
  0x54   : > { %s2630_s23 = scalar_lea.vmem %s368_s11, 1024  ;;  %p2638_p7 = scmp.lt.s32.totalorder %s368_s11, %s368_s11 }
  0x55   : > { %p2631_p2 = scmp.ne.s32.totalorder %s368_s11, %s2630_s23  ;;  %p2639_p9 = scmp.lt.s32.totalorder %s2630_s23, %s2630_s23 }
  0x57   : > { %p2633_p0 = pnand %p2631_p2, %p2541_p13  ;;  %p2640_p1 = por %p2639_p9, %p2638_p7 }
  0x58   : > { %2396 = dma.hbm_to_vmem [thread:$0]  (!%p2969_p12), %s4225_s4, 256, %s349_s15, [#allocation7], %s4190_s2, %s4190_s2, %s4191_s3  }
  0x59   : > { %p2634_p5 = pneg %p2633_p0 }
  0x5b   : > { %p2641_p11 = pnand %p2640_p1, %p2634_p5 }
  0x5d   : > { %2644 = shalt.err (!%p2641_p11)
}
  0x5e   : > { %s4226_s24 = smov 4   ;;  %s4227_s12 = smov 64  }
  0x5f   : > { %s4228_s7 = sld [smem:[#allocation32_spill]]  ;;  %s38_s20 = sadd.s32 1, %s2797_s25 }
  0x60   : > { %s265_s16 = sadd.s32 1, %s2773_s19  ;;  %p39_p13 = scmp.ge.s32.totalorder %s38_s20, 2 }
  0x61   : > { %p272_p8 = scmp.ne.s32.totalorder %s2773_s19, %s2769_s18  ;;  %s410_s13 = sand.u32 1, %s2773_s19  }
  0x62   : > { %s2204_s9 = sshll.u32 %s2797_s25, 4  ;;  %s4349_s20 = smov (%p39_p13, %s38_s20), 0 }
  0x63   : > { %4229 = sst [smem:[#allocation24_spill]] %s4349_s20  ;;  %s4230_s5 = sadd.s32 1, %s2801_s26 }
  0x64   : > { %s4351_s5 = smov (!%p39_p13, %s4230_s5), %s2801_s26  ;;  %s261_s1 = ssub.s32 %s2797_s25, %s4349_s20 }
  0x65   : > { %2399 = dma.hbm_to_vmem [thread:$0]  (!%p2969_p12), %s4228_s7, 1024, %s368_s11, [#allocation10], %s4227_s12, %s4227_s12, %s4226_s24  }
  0x66   : > { %p4231_p3 = scmp.eq.s32.totalorder %s2805_s27, 0  ;;  %p43_p12 = scmp.ge.s32.totalorder %s4351_s5, 2 }
  0x67   : > { %p4233_p0 = scmp.eq.s32.totalorder %s2935_s28, 3  ;;  %s2123_s11 = sshll.u32 %s410_s13, 7 }
  0x68   : > { %p3053_p2 = por %p272_p8, %p4231_p3  ;;  %s2126_s23 = sshll.u32 %s2801_s26, 5 }
  0x69   : > { %p3059_p5 = por %p4233_p0, %p272_p8  ;;  %s4353_s5 = smov (%p43_p12, %s4351_s5), 0 }
  0x6a   : > { %s419_s24 = sadd.s32 %s2204_s9, %s2126_s23  ;;  %s45_s12 = ssub.s32 %s2801_s26, %s4353_s5 }
  0x6b   : > { %s4234_s8 = scalar_select %p3059_p5, 1, 0 }
  0x6c   : > { %s2127_s15 = sshll.u32 %s419_s24, 7  ;;  %p46_p7 = scmp.eq.s32.totalorder %s45_s12, 0 }
  0x6d   : > { %s262_s17 = sor.u32 %s261_s1, %s45_s12  ;;  %s421_s0 = scalar_lea.hbm %s4177_s10, %s2127_s15 }
  0x6e   : > { %p263_p9 = scmp.eq.s32.totalorder %s262_s17, 0  ;;  %s4235_s4 = sadd.s32 1, %s2785_s22 }
  0x6f   : > { %s3074_s7 = scalar_select %p46_p7, %s2785_s22, %s4235_s4  }
  0x70   : > { %s3077_s20 = scalar_select %p263_p9, %s2773_s19, %s265_s16  }
  0x71   : > { %s412_s13 = scalar_lea.vmem [#allocation11], %s2123_s11  ;;  %p4236_p1 = scmp.lt.s32.totalorder %s2805_s27, 4 }
  0x72   : > { %s422_s25 = sshll.u32 %s412_s13, 4  ;;  %s2815_s4 = smov [#allocation11]   ;;  %s423_s25 = int_to_ptr.vmem [resolvable:$true] %s422_s25 }
  0x73   : > { %p3083_p11 = pnand %p4236_p1, %p3053_p2  ;;  %s2658_s1 = scalar_lea.vmem %s423_s25, 2048 }
  0x74   : > { %p2659_p8 = scmp.ne.s32.totalorder %s423_s25, %s2658_s1  ;;  %s2663_s2 = sshll.u32 %s2815_s4, 4  ;;  %s2664_s2 = int_to_ptr.vmem [resolvable:$false] %s2663_s2 }
  0x75   : > { %p2647_p13 = pneg %p3083_p11  ;;  %s2665_s3 = scalar_lea.vmem %s2664_s2, 4096 }
  0x76   : > { %p2666_p0 = scmp.lt.s32.totalorder %s423_s25, %s2664_s2  ;;  %p2667_p7 = scmp.lt.s32.totalorder %s2665_s3, %s2658_s1 }
  0x77   : > { %p2661_p3 = pnand %p2659_p8, %p2647_p13 }
  0x78   : > { %p2668_p9 = por %p2667_p7, %p2666_p0 }
  0x79   : > { %p2662_p12 = pneg %p2661_p3 }
  0x7b   : > { %p2669_p5 = pnand %p2668_p9, %p2662_p12 }
  0x7d   : > { %2672 = shalt.err (!%p2669_p5)
}
  0x7e   : > { %s4238_s16 = smov 8   ;;  %s4239_s6 = smov 128  }
  0x7f   : > { %2406 = dma.hbm_to_vmem [thread:$0]  (!%p3083_p11), %s421_s0, 2048, %s423_s25, %s3006_s29, %s4239_s6, %s4239_s6, %s4238_s16  }
  0x80   : > { %434 = sbr.rel (%p2961_p10) target bundleno = 737 (0x2e1), region = 64  ;;  %s436_s11 = sand.u32 (!%p2961_p10), 1, %s2935_s28  }
  0x81   : > { %s438_s23 = sand.u32 (!%p2961_p10), 1, %s2781_s21   ;;  %s437_s12 = scalar_lea.sflag (!%p2961_p10), [#allocation4], %s436_s11 }
  0x82   : > { %s3099_s24 = smul.u32 (!%p2961_p10), 432, %s438_s23 }
  0x84   : > { %s440_s15 = scalar_lea.vmem (!%p2961_p10), [#allocation3], %s3099_s24 }
  0x85   : > { %2744 = dma.done.wait (%p2945_p4), %s437_s12, 6912  }
  0x86   : > { %2746 = vsyncadd (%p2945_p4), %s437_s12, 4294960384  ;;  %p4240_p2 = scmp.eq.s32.totalorder %s2935_s28, 0 }
  0x88   : > { %2748 = dma.done.wait (%p4240_p2), [#allocation7], 1280   ;;  %p4241_p10 = pmov %p4240_p2 }
  0x89   : > { %p4242_p5 = pmov %p4240_p2 }
  0x8a   : > { %2750 = vsyncadd (%p4241_p10), [#allocation7], 4294966016 }
  0x8b   : > { %2752 = dma.done.wait (%p4242_p5), [#allocation10], 1024   ;;  %p4243_p1 = pmov %p4240_p2 }
  0x8c   : > { %s459_s25 = sand.u32 1, %s2769_s18  }
  0x8d   : > { %2754 = vsyncadd (%p4243_p1), [#allocation10], 4294966272  ;;  %s3117_s14 = sshll.u32 %s459_s25, 7 }
  0x8e   : > { %s3120_s30 = scalar_lea.vmem [#allocation11], %s3117_s14 }
  0x8f   : > { %2756 = dma.done.wait (%p2951_p6), %s437_s12, 2048  }
  0x90   : > { %2758 = vsyncadd (%p2951_p6), %s437_s12, 4294965248  ;;  %v2816_v0 = vmov 0.0   ;;  %vm2817_vm0 = vmmov 0   ;;  %v2518_v1 = vld [vmem:[#allocation6 + $0x38] sm:$0xff]   ;;  %v2519_v2 = vld [vmem:[#allocation6 + $0x30] sm:$0xff]   ;;  %s4245_s28 = sld [smem:[#allocation19_spill]]  ;;  %v917_v62 = vlaneseq }
  0x91   : > { %2245 = vmatprep.subr.bf16.mxu0 %v2816_v0  ;;  %2353 = vmatprep.subr.bf16.mxu1 %v2816_v0  ;;  %v2520_v3 = vld [vmem:[#allocation6 + $0x28] sm:$0xff]   ;;  %v2521_v4 = vld [vmem:[#allocation6 + $0x20] sm:$0xff]   ;;  %v2522_v5 = vld [vmem:[#allocation6 + $0x18] sm:$0xff]   ;;  %s4268_s4 = sld [smem:[#allocation27_spill]]  ;;  %p4334_p6 = scmp.ne.s32.totalorder %s4234_s8, 0 }
  0x92   : > { %2261 = vmatprep.mubr.msk.bf16.mxu0 %vm2817_vm0, %v2816_v0  ;;  %2301 = vmatprep.mubr.msk.bf16.mxu1 %vm2817_vm0, %v2816_v0  ;;  %v2523_v6 = vld [vmem:[#allocation6 + $0x10] sm:$0xff]   ;;  %v2524_v7 = vld [vmem:[#allocation6 + $0x8] sm:$0xff]   ;;  %v2525_v8 = vld [vmem:[#allocation6] sm:$0xff]   ;;  %s4273_s16 = sld [smem:[#allocation28_spill]] }
  0x93   : > { %2246 = vmatpush3.bf16.msra.mxu0 %v2518_v1  ;;  %2361 = vmatpush3.bf16.msra.mxu1 %v2518_v1  ;;  %v2526_v54 = vld [vmem:[#allocation9 + $0x38] sm:$0xff]   ;;  %v2527_v55 = vld [vmem:[#allocation9 + $0x30] sm:$0xff]   ;;  %v2528_v56 = vld [vmem:[#allocation9 + $0x28] sm:$0xff]   ;;  %v3208_v1 = vshrl.u32 %v917_v62, 7  ;;  %s4327_s23 = sld [smem:[#allocation30_spill]] }
  0x94   : > { %2247 = vmatprep.subr.bf16.mxu0 %v2816_v0  ;;  %2354 = vmatprep.subr.bf16.mxu1 %v2816_v0  ;;  %v2529_v57 = vld [vmem:[#allocation9 + $0x20] sm:$0xff]   ;;  %v2530_v58 = vld [vmem:[#allocation9 + $0x18] sm:$0xff]   ;;  %v2531_v59 = vld [vmem:[#allocation9 + $0x10] sm:$0xff]   ;;  %s4330_s1 = sld [smem:[#allocation34_spill]] }
  0x95   : > { %v2532_v60 = vld [vmem:[#allocation9 + $0x8] sm:$0xff]   ;;  %v2533_v61 = vld [vmem:[#allocation9] sm:$0xff]   ;;  %vm4199_vm6 = vcmp.ge.s32.totalorder %v3208_v1, 1  ;;  %s4332_s24 = sld [smem:[#allocation35_spill]] }
  0x96   : > { %s2135_s29 = smul.u32 192, %s4245_s28  ;;  %s2134_s13 = sshll.u32 %s4245_s28, 3 }
  0x97   : > { %2248 = vmatpush3.bf16.msra.mxu0 %v2519_v2  ;;  %2362 = vmatpush3.bf16.msra.mxu1 %v2519_v2  ;;  %v907_v63 = vstv %s2134_s13  ;;  %s2205_s2 = sshll.u32 %s4245_s28, 4 }
  0x98   : > { %2249 = vmatprep.subr.bf16.mxu0 %v2816_v0  ;;  %2355 = vmatprep.subr.bf16.mxu1 %v2816_v0  ;;  %s3145_s17 = scalar_lea.vmem %s440_s15, %s2135_s29 [#allocation3]  ;;  %v908_v2 = vadd.s32 1, %v907_v63  ;;  %vm921_vm1 = vcmp.ge.s32.totalorder %v907_v63, 1  ;;  %vm931_vm2 = vcmp.le.s32.totalorder %v907_v63, 16  ;;  %s4328_s15 = sld [smem:[#allocation31_spill]] }
  0x99   : > { %v511_v9 = vld [vmem:[%s3145_s17] sm:$0xff]  ;;  %v512_v10 = vld [vmem:[%s3145_s17 + $0x8] sm:$0xff]  ;;  %v513_v15 = vld [vmem:[%s3145_s17 + $0x10] sm:$0xff]  ;;  %s2818_s29 = smov [#allocation12]  }
  0x9a   : > { %v531_v11 = vld [vmem:[%s3145_s17 + $0xa0] sm:$0xff]  ;;  %v532_v12 = vld [vmem:[%s3145_s17 + $0xa8] sm:$0xff]  ;;  %v541_v13 = vpack.c.bf16 %v512_v10, %v511_v9  ;;  %v514_v16 = vld [vmem:[%s3145_s17 + $0x18] sm:$0xff]  ;;  %vm922_vm3 = vcmp.ge.s32.totalorder %v908_v2, 1  ;;  %vm932_vm4 = vcmp.le.s32.totalorder %v908_v2, 16  ;;  %v914_v10 = vadd.s32 7, %v907_v63 }
  0x9b   : > { %2250 = vmatpush3.bf16.msra.mxu0 %v2520_v3  ;;  %2363 = vmatpush3.bf16.msra.mxu1 %v2520_v3  ;;  %v551_v14 = vpack.c.bf16 %v532_v12, %v531_v11  ;;  %v533_v17 = vld [vmem:[%s3145_s17 + $0xb0] sm:$0xff]  ;;  %v534_v18 = vld [vmem:[%s3145_s17 + $0xb8] sm:$0xff]  ;;  %v542_v19 = vpack.c.bf16 %v514_v16, %v513_v15  ;;  %v515_v21 = vld [vmem:[%s3145_s17 + $0x20] sm:$0xff]  ;;  %v3211_v3 = vadd.s32 16, %v3208_v1  ;;  %v4262_v16 = vmov 0  ;;  %s4333_s12 = smov %s4332_s24 }
  0x9c   : > { %2251 = vmatprep.subr.bf16.mxu0 %v2816_v0  ;;  %2356 = vmatprep.subr.bf16.mxu1 %v2816_v0  ;;  %v552_v20 = vpack.c.bf16 %v534_v18, %v533_v17  ;;  %v516_v22 = vld [vmem:[%s3145_s17 + $0x28] sm:$0xff]  ;;  %v535_v23 = vld [vmem:[%s3145_s17 + $0xc0] sm:$0xff]  ;;  %v517_v27 = vld [vmem:[%s3145_s17 + $0x30] sm:$0xff]  ;;  %v911_v17 = vadd.s32 4, %v907_v63 }
  0x9d   : > { %v536_v24 = vld [vmem:[%s3145_s17 + $0xc8] sm:$0xff]  ;;  %v543_v25 = vpack.c.bf16 %v516_v22, %v515_v21  ;;  %v518_v28 = vld [vmem:[%s3145_s17 + $0x38] sm:$0xff]  ;;  %v537_v29 = vld [vmem:[%s3145_s17 + $0xd0] sm:$0xff]  ;;  %vm4196_vm7 = vcmp.le.s32.totalorder %v3211_v3, 16 }
  0x9e   : > { %v553_v26 = vpack.c.bf16 %v536_v24, %v535_v23  ;;  %v538_v30 = vld [vmem:[%s3145_s17 + $0xd8] sm:$0xff]  ;;  %v544_v31 = vpack.c.bf16 %v518_v28, %v517_v27  ;;  %v519_v33 = vld [vmem:[%s3145_s17 + $0x40] sm:$0xff]  ;;  %v520_v34 = vld [vmem:[%s3145_s17 + $0x48] sm:$0xff] }
  0x9f   : > { %2252 = vmatpush3.bf16.msra.mxu0 %v2521_v4  ;;  %2364 = vmatpush3.bf16.msra.mxu1 %v2521_v4  ;;  %v554_v32 = vpack.c.bf16 %v538_v30, %v537_v29  ;;  %v539_v35 = vld [vmem:[%s3145_s17 + $0xe0] sm:$0xff]  ;;  %v540_v36 = vld [vmem:[%s3145_s17 + $0xe8] sm:$0xff]  ;;  %v545_v37 = vpack.c.bf16 %v520_v34, %v519_v33  ;;  %v521_v39 = vld [vmem:[%s3145_s17 + $0x50] sm:$0xff]  ;;  %v909_v4 = vadd.s32 2, %v907_v63 }
  0xa0   : > { %2253 = vmatprep.subr.bf16.mxu0 %v2816_v0  ;;  %2357 = vmatprep.subr.bf16.mxu1 %v2816_v0  ;;  %v555_v38 = vpack.c.bf16 %v540_v36, %v539_v35  ;;  %v522_v40 = vld [vmem:[%s3145_s17 + $0x58] sm:$0xff]  ;;  %v523_v42 = vld [vmem:[%s3145_s17 + $0x60] sm:$0xff]  ;;  %v524_v43 = vld [vmem:[%s3145_s17 + $0x68] sm:$0xff]  ;;  %v4279_v35 = vmov 0  ;;  %v916_v36 = vadd.s32 9, %v907_v63 }
  0xa1   : > { %v546_v41 = vpack.c.bf16 %v522_v40, %v521_v39  ;;  %v547_v44 = vpack.c.bf16 %v524_v43, %v523_v42  ;;  %v525_v45 = vld [vmem:[%s3145_s17 + $0x70] sm:$0xff]  ;;  %v526_v46 = vld [vmem:[%s3145_s17 + $0x78] sm:$0xff]  ;;  %v527_v48 = vld [vmem:[%s3145_s17 + $0x80] sm:$0xff]  ;;  %vm923_vm8 = vcmp.ge.s32.totalorder %v909_v4, 1  ;;  %vm933_vm9 = vcmp.le.s32.totalorder %v909_v4, 16 }
  0xa2   : > { %v548_v47 = vpack.c.bf16 %v526_v46, %v525_v45  ;;  %v528_v49 = vld [vmem:[%s3145_s17 + $0x88] sm:$0xff]  ;;  %v529_v51 = vld [vmem:[%s3145_s17 + $0x90] sm:$0xff]  ;;  %v530_v52 = vld [vmem:[%s3145_s17 + $0x98] sm:$0xff]  ;;  %s4329_s17 = sld [smem:[#allocation33_spill]] }
  0xa3   : > { %2254 = vmatpush3.bf16.msra.mxu0 %v2522_v5  ;;  %2365 = vmatpush3.bf16.msra.mxu1 %v2522_v5  ;;  %v549_v50 = vpack.c.bf16 %v528_v49, %v527_v48  ;;  %v550_v53 = vpack.c.bf16 %v530_v52, %v529_v51  ;;  %vm3213_vm5 = vmand %vm921_vm1, %vm931_vm2  ;;  %v3286_v21 = vld [vmem:[%s4268_s4] ss:$0 sm:$0xff]  ;;  %v3586_v23 = vld [vmem:[#allocation8 + $0x1] ss:$0 sm:$0xff]  ;;  %s4037_s4 = scalar_lea.vmem [#allocation12], %s3117_s14  ;;  %s4331_s14 = sld [smem:[#allocation20_spill]] }
  0xa4   : > { %2255 = vmatprep.subr.bf16.mxu0 %v2816_v0  ;;  %2358 = vmatprep.subr.bf16.mxu1 %v2816_v0  ;;  %vm3219_vm10 = vmand %vm922_vm3, %vm932_vm4  ;;  %v3329_v33 = vsel %vm3213_vm5, 1.0, %v2816_v0  ;;  %s1974_s28 = sshll.u32 %s4037_s4, 4  ;;  %s4096_s28 = int_to_ptr.vmem [resolvable:$true] %s1974_s28 }
  0xa5   : > { %vm3227_vm11 = vmand %vm3213_vm5, %vm4199_vm6  ;;  %s2673_s0 = scalar_lea.vmem %s4096_s28, 2048 }
  0xa6   : > { %vm3235_vm12 = vmand %vm3213_vm5, %vm4196_vm7  ;;  %p2674_p4 = scmp.ne.s32.totalorder %s4096_s28, %s2673_s0 }
  0xa7   : > { %2256 = vmatpush3.bf16.msra.mxu0 %v2523_v6  ;;  %2366 = vmatpush3.bf16.msra.mxu1 %v2523_v6  ;;  %v913_v6 = vadd.s32 6, %v907_v63  ;;  %vm3239_vm13 = vmand %vm923_vm8, %vm933_vm9  ;;  %vm928_vm8 = vcmp.ge.s32.totalorder %v914_v10, 1  ;;  %vm938_vm9 = vcmp.le.s32.totalorder %v914_v10, 16  ;;  %v3343_v39 = vsel %vm3235_vm12, 1.0, %v2816_v0 }
  0xa8   : > { %2257 = vmatprep.subr.bf16.mxu0 %v2816_v0  ;;  %2359 = vmatprep.subr.bf16.mxu1 %v2816_v0  ;;  %vm3247_vm14 = vmand %vm3219_vm10, %vm4199_vm6  ;;  %v3412_v2 = vsel %vm3239_vm13, 1.0, %v2816_v0  ;;  %p2675_p11 = pnand %p2674_p4, %p4334_p6 }
  0xa9   : > { %vm927_vm15 = vcmp.ge.s32.totalorder %v913_v6, 1  ;;  %vm3255_vm1 = vmand %vm3219_vm10, %vm4196_vm7  ;;  %s2200_s3 = sshll.u32 %s4331_s14, 5 }
  0xaa   : > { %vm3263_vm4 = vmand %vm3239_vm13, %vm4199_vm6  ;;  %p2676_p13 = pneg %p2675_p11 }
  0xab   : > { %2258 = vmatpush3.bf16.msra.mxu0 %v2524_v7  ;;  %2367 = vmatpush3.bf16.msra.mxu1 %v2524_v7  ;;  %v4248_v7 = vmov 0  ;;  %v3370_v46 = vsel %vm3263_vm4, 1.0, %v2816_v0 }
  0xac   : > { %2259 = vmatprep.subr.bf16.mxu0 %v2816_v0  ;;  %2360 = vmatprep.subr.bf16.mxu1 %v2816_v0  ;;  %v4249_v7 = vsel %vm3219_vm10, 4294967295, %v4248_v7 }
  0xaf   : > { %2260 = vmatpush3.bf16.msra.mxu0 %v2525_v8  ;;  %2368 = vmatpush3.bf16.msra.mxu1 %v2525_v8  ;;  %v910_v8 = vadd.s32 3, %v907_v63 }
  0xb0   : > { %2321 = vmatprep.subr.bf16.mxu1 %v2526_v54 }
  0xb1   : > { %vm924_vm2 = vcmp.ge.s32.totalorder %v910_v8, 1  ;;  %vm934_vm3 = vcmp.le.s32.totalorder %v910_v8, 16 }
  0xb2   : > { %2262 = vmatmul.mubr.bf16.vlgmr.msra.gmra.mxu0 %v541_v13  ;;  %2302 = vmatmul.mubr.bf16.vlgmr.msra.gmra.mxu1 %v551_v14  ;;  %v4256_v13 = vmov 0  ;;  %v4258_v14 = vmov 0  ;;  %vm3279_vm10 = vmand %vm924_vm2, %vm934_vm3  ;;  %vm4278_vm3 = vcmp.le.s32.totalorder %v3211_v3, 16 }
  0xb3   : > { %2265 = vmatprep.mubr.msk.bf16.mxu0 %vm2817_vm0, %v2816_v0  ;;  %2305 = vmatprep.mubr.msk.bf16.mxu1 %vm2817_vm0, %v2816_v0  ;;  %v4257_v13 = vsel %vm3247_vm14, 4294967295, %v4256_v13  ;;  %v4259_v14 = vsel %vm3255_vm1, 4294967295, %v4258_v14  ;;  %vm3275_vm1 = vmand %vm3239_vm13, %vm4196_vm7 }
  0xb4   : > { %2322 = vmatpush3.bf16.msra.mxu1 %v2526_v54  ;;  %vm3309_vm2 = vmand %vm3279_vm10, %vm4199_vm6  ;;  %vm4281_vm5 = vnez %v4257_v13  ;;  %vm4286_vm12 = vnez %v4259_v14  ;;  %v4291_v54 = vmov 0  ;;  %v3417_v4 = vsel %vm3275_vm1, 1.0, %v2816_v0 }
  0xb5   : > { %2323 = vmatprep.subr.bf16.mxu1 %v2527_v55  ;;  %v3348_v40 = vsel %vm4281_vm5, 1.0, %v2816_v0  ;;  %v3365_v45 = vsel %vm4286_vm12, 1.0, %v2816_v0  ;;  %vm940_vm12 = vcmp.le.s32.totalorder %v916_v36, 16  ;;  %v3422_v5 = vsel %vm3309_vm2, 1.0, %v2816_v0 }
  0xb8   : > { %2324 = vmatpush3.bf16.msra.mxu1 %v2527_v55 }
  0xb9   : > { %2325 = vmatprep.subr.bf16.mxu1 %v2528_v56 }
  0xba   : > { %2266 = vmatmul.mubr.bf16.gmra.mxu0 %v542_v19  ;;  %2306 = vmatmul.mubr.bf16.gmra.mxu1 %v552_v20  ;;  %v915_v20 = vadd.s32 8, %v907_v63 }
  0xbb   : > { %2269 = vmatprep.mubr.msk.bf16.mxu0 %vm2817_vm0, %v2816_v0  ;;  %2309 = vmatprep.mubr.msk.bf16.mxu1 %vm2817_vm0, %v2816_v0 }
  0xbc   : > { %2326 = vmatpush3.bf16.msra.mxu1 %v2528_v56 }
  0xbd   : > { %2327 = vmatprep.subr.bf16.mxu1 %v2529_v57 }
  0xc0   : > { %2328 = vmatpush3.bf16.msra.mxu1 %v2529_v57 }
  0xc1   : > { %2329 = vmatprep.subr.bf16.mxu1 %v2530_v58 }
  0xc2   : > { %2270 = vmatmul.mubr.bf16.gmra.mxu0 %v543_v25  ;;  %2310 = vmatmul.mubr.bf16.gmra.mxu1 %v553_v26  ;;  %v3303_v25 = vld [vmem:[%s4273_s16] ss:$0 sm:$0xff]  ;;  %s1971_s16 = sadd.s32 %s2205_s2, %s2200_s3 }
  0xc3   : > { %2273 = vmatprep.mubr.msk.bf16.mxu0 %vm2817_vm0, %v2816_v0  ;;  %2313 = vmatprep.mubr.msk.bf16.mxu1 %vm2817_vm0, %v2816_v0  ;;  %s2201_s6 = sshll.u32 %s1971_s16, 7 }
  0xc4   : > { %2330 = vmatpush3.bf16.msra.mxu1 %v2530_v58 }
  0xc5   : > { %2331 = vmatprep.subr.bf16.mxu1 %v2531_v59 }
  0xc8   : > { %2332 = vmatpush3.bf16.msra.mxu1 %v2531_v59 }
  0xc9   : > { %2333 = vmatprep.subr.bf16.mxu1 %v2532_v60 }
  0xca   : > { %2274 = vmatmul.mubr.bf16.gmra.mxu0 %v544_v31  ;;  %2314 = vmatmul.mubr.bf16.gmra.mxu1 %v554_v32  ;;  %v2146_v31 = vsel %vm3227_vm11, 1.0, %v2816_v0  ;;  %vm4282_vm11 = vcmp.ge.s32.totalorder %v911_v17, 1 }
  0xcb   : > { %2277 = vmatprep.mubr.msk.bf16.mxu0 %vm2817_vm0, %v2816_v0  ;;  %2317 = vmatprep.mubr.msk.bf16.mxu1 %vm2817_vm0, %v2816_v0 }
  0xcc   : > { %2334 = vmatpush3.bf16.msra.mxu1 %v2532_v60 }
  0xcd   : > { %2335 = vmatprep.subr.bf16.mxu1 %v2533_v61 }
  0xd0   : > { %2336 = vmatpush3.bf16.msra.mxu1 %v2533_v61 }
  0xd2   : > { %2278 = vmatmul.mubr.bf16.gmra.mxu0 %v545_v37  ;;  %2318 = vmatmul.mubr.bf16.gmra.mxu1 %v555_v38  ;;  %v912_v37 = vadd.s32 5, %v907_v63 }
  0xd3   : > { %2281 = vmatprep.mubr.msk.bf16.mxu0 %vm2817_vm0, %v2816_v0 }
  0xda   : > { %2282 = vmatmul.mubr.bf16.gmra.mxu0 %v546_v41 }
  0xdb   : > { %2285 = vmatprep.mubr.msk.bf16.mxu0 %vm2817_vm0, %v2816_v0 }
  0xe2   : > { %2286 = vmatmul.mubr.bf16.gmra.mxu0 %v547_v44 }
  0xe3   : > { %2289 = vmatprep.mubr.msk.bf16.mxu0 %vm2817_vm0, %v2816_v0 }
  0xea   : > { %2290 = vmatmul.mubr.bf16.gmra.mxu0 %v548_v47 }
  0xeb   : > { %2293 = vmatprep.mubr.msk.bf16.mxu0 %vm2817_vm0, %v2816_v0 }
  0xf2   : > { %2294 = vmatmul.mubr.bf16.gmra.mxu0 %v549_v50 }
  0xf3   : > { %2297 = vmatprep.mubr.msk.bf16.mxu0 %vm2817_vm0, %v2816_v0  ;;  %vm937_vm0 = vcmp.le.s32.totalorder %v913_v6, 16 }
  0xf4   : > { %vm3267_vm14 = vmand %vm927_vm15, %vm937_vm0 }
  0xf5   : > { %v4263_v16 = vsel %vm3267_vm14, 4294967295, %v4262_v16  ;;  %vm3288_vm15 = vmand %vm928_vm8, %vm938_vm9  ;;  %vm935_vm8 = vcmp.le.s32.totalorder %v911_v17, 16 }
  0xf6   : > { %vm3296_vm0 = vmand %vm3267_vm14, %vm4196_vm7  ;;  %vm939_vm14 = vcmp.le.s32.totalorder %v915_v20, 16  ;;  %vm4285_vm7 = vnez %v4249_v7  ;;  %v2168_v7 = vsel %vm3288_vm15, 1.0, %v2816_v0 }
  0xf7   : > { %vm3319_vm9 = vmand %vm3288_vm15, %vm4199_vm6  ;;  %v3360_v44 = vsel %vm4285_vm7, 1.0, %v2816_v0  ;;  %v2166_v47 = vsel %vm3296_vm0, 1.0, %v2816_v0  ;;  %vm4290_vm7 = vcmp.le.s32.totalorder %v3211_v3, 16 }
  0xf8   : > { %vm3335_vm6 = vmand %vm3288_vm15, %vm4278_vm3  ;;  %v2167_v17 = vsel %vm3319_vm9, 1.0, %v2816_v0 }
  0xf9   : > { %v4280_v35 = vsel %vm3335_vm6, 4294967295, %v4279_v35  ;;  %vm3353_vm3 = vmand %vm4282_vm11, %vm935_vm8  ;;  %vm4287_vm8 = vcmp.ge.s32.totalorder %v915_v20, 1  ;;  %vm930_vm11 = vcmp.ge.s32.totalorder %v916_v36, 1  ;;  %vm936_vm6 = vcmp.le.s32.totalorder %v912_v37, 16 }
  0xfa   : > { %2298 = vmatmul.mubr.bf16.gmra.mxu0 %v550_v53  ;;  %vm3377_vm5 = vmand %vm4287_vm8, %vm939_vm14  ;;  %vm4293_vm14 = vcmp.ge.s32.totalorder %v3208_v1, 1  ;;  %vm926_vm8 = vcmp.ge.s32.totalorder %v912_v37, 1  ;;  %v3451_v20 = vsel %vm3279_vm10, 1.0, %v2816_v0  ;;  %vm4306_vm15 = vnez %v4280_v35 }
  0xfb   : > { %vm3387_vm4 = vmand %vm3279_vm10, %vm4290_vm7  ;;  %v3464_v27 = vsel %vm4306_vm15, 1.0, %v2816_v0  ;;  %v3488_v35 = vsel %vm3377_vm5, 1.0, %v2816_v0 }
  0xfc   : > { %v4292_v54 = vsel %vm3387_vm4, 4294967295, %v4291_v54  ;;  %vm3395_vm0 = vmand %vm3353_vm3, %vm4293_vm14 }
  0xfd   : > { %vm4296_vm7 = vmmov %vm4293_vm14  ;;  %vm4299_vm14 = vcmp.le.s32.totalorder %v3211_v3, 16  ;;  %vm4307_vm10 = vnez %v4292_v54 }
  0xfe   : > { %vm3405_vm4 = vmand %vm3377_vm5, %vm4296_vm7  ;;  %v3469_v19 = vsel %vm4307_vm10, 1.0, %v2816_v0 }
  0xff   : > { %vm3431_vm13 = vmand %vm3377_vm5, %vm4299_vm14 }
 0x100   : > { %vm3440_vm1 = vmand %vm926_vm8, %vm936_vm6 }
 0x101   : > { %vm3455_vm6 = vmand %vm930_vm11, %vm940_vm12  ;;  %v3576_v1 = vsel %vm3440_vm1, 1.0, %v2816_v0 }
 0x102   : > { %vm4308_vm2 = vmmov %vm4299_vm14 }
 0x103   : > { %vm3475_vm9 = vmand %vm3353_vm3, %vm4308_vm2 }
 0x104   : > { %vm4311_vm11 = vmmov %vm4296_vm7 }
 0x105   : > { %vm3494_vm12 = vmand %vm3440_vm1, %vm4311_vm11 }
 0x106   : > { %vm4317_vm8 = vmmov %vm4308_vm2  ;;  %v3547_v62 = vsel %vm3494_vm12, 1.0, %v2816_v0 }
 0x172   : > { %v654_v24 = vpop.f32.mrf.mxu0  ;;  %v734_v26 = vpop.f32.mrf.mxu1 }
 0x173   : > { %v780_v28 = vmul.f32 %v3286_v21, %v654_v24  ;;  %v800_v29 = vmul.f32 %v3286_v21, %v734_v26 }
 0x174   : > { %v2263_v32 = vpop.f32.mrf.mxu0  ;;  %v2303_v34 = vpop.f32.mrf.mxu1 }
 0x175   : > { %v817_v38 = vadd.f32 %v3303_v25, %v780_v28  ;;  %v837_v41 = vadd.f32 %v3303_v25, %v800_v29  ;;  %v3483_v34 = vsel %vm3395_vm0, 1.0, %v2816_v0  ;;  %vm4314_vm0 = vmmov %vm4296_vm7 }
 0x176   : > { %v657_v43 = vpop.f32.mrf.mxu0  ;;  %v737_v48 = vpop.f32.mrf.mxu1  ;;  %vm3505_vm5 = vmand %vm3455_vm6, %vm4314_vm0 }
 0x177   : > { %v847_v50 = vmax.f32 %v817_v38, 0.0  ;;  %v781_v51 = vmul.f32 %v3286_v21, %v657_v43  ;;  %v867_v52 = vmax.f32 %v837_v41, 0.0  ;;  %v801_v53 = vmul.f32 %v3286_v21, %v737_v48  ;;  %vm4323_vm14 = vmmov %vm4314_vm0 }
 0x178   : > { %v2264_v55 = vpop.f32.mrf.mxu0  ;;  %v2304_v56 = vpop.f32.mrf.mxu1 }
 0x179   : > { %v877_v58 = vmin.f32 %v847_v50, 6.0  ;;  %v818_v59 = vadd.f32 %v3303_v25, %v781_v51  ;;  %v897_v60 = vmin.f32 %v867_v52, 6.0  ;;  %v838_v61 = vadd.f32 %v3303_v25, %v801_v53 }
 0x17a   : > { %v662_v63 = vpop.f32.mrf.mxu0  ;;  %v742_v6 = vpop.f32.mrf.mxu1  ;;  %v3517_v52 = vsel %vm3353_vm3, 1.0, %v2816_v0  ;;  %v3524_v56 = vsel %vm3431_vm13, 1.0, %v2816_v0  ;;  %vm4320_vm3 = vmmov %vm4308_vm2  ;;  %vm4324_vm13 = vnez %v4263_v16 }
 0x17b   : > { %v3435_v9 = vmul.f32 %v2146_v31, %v877_v58  ;;  %v848_v10 = vmax.f32 %v818_v59, 0.0  ;;  %v782_v11 = vmul.f32 %v3286_v21, %v662_v63  ;;  %v1097_v12 = vmul.f32 %v2166_v47, %v897_v60  ;;  %vm3553_vm7 = vmand %vm3440_vm1, %vm4320_vm3 }
 0x17c   : > { %v2267_v14 = vpop.f32.mrf.mxu0  ;;  %v868_v15 = vmax.f32 %v838_v61, 0.0  ;;  %v802_v18 = vmul.f32 %v3286_v21, %v742_v6  ;;  %v2307_v22 = vpop.f32.mrf.mxu1  ;;  %v3537_v60 = vsel %vm3475_vm9, 1.0, %v2816_v0  ;;  %v3542_v61 = vsel %vm3505_vm5, 1.0, %v2816_v0  ;;  %vm3563_vm15 = vmand %vm4324_vm13, %vm4323_vm14 }
 0x17d   : > { %1107 = vst [vmem:[#allocation2] sm:$0xff] %v3435_v9  ;;  %v878_v24 = vmin.f32 %v848_v10, 6.0  ;;  %v819_v26 = vadd.f32 %v3303_v25, %v782_v11  ;;  %1127 = vst [vmem:[#allocation2 + $0xa0] sm:$0xff] %v1097_v12  ;;  %v3604_v36 = vsel %vm4324_vm13, 1.0, %v2816_v0 }
 0x17e   : > { %v665_v29 = vpop.f32.mrf.mxu0  ;;  %v898_v30 = vmin.f32 %v868_v15, 6.0  ;;  %v839_v31 = vadd.f32 %v3303_v25, %v802_v18  ;;  %v745_v32 = vpop.f32.mrf.mxu1  ;;  %v3578_v18 = vld [vmem:[#allocation8] ss:$0 sm:$0xff] }
 0x17f   : > { %v1078_v37 = vmul.f32 %v3329_v33, %v878_v24  ;;  %v849_v38 = vmax.f32 %v819_v26, 0.0  ;;  %v783_v41 = vmul.f32 %v3286_v21, %v665_v29  ;;  %v803_v43 = vmul.f32 %v3286_v21, %v745_v32 }
 0x180   : > { %v2268_v48 = vpop.f32.mrf.mxu0  ;;  %v1098_v49 = vmul.f32 %v2167_v17, %v898_v30  ;;  %v869_v50 = vmax.f32 %v839_v31, 0.0  ;;  %v2308_v51 = vpop.f32.mrf.mxu1  ;;  %v3512_v33 = vsel %vm3405_vm4, 1.0, %v2816_v0  ;;  %vm3530_vm4 = vmand %vm3455_vm6, %vm4317_vm8  ;;  %v3589_v30 = vld [vmem:[#allocation8 + $0x2] ss:$0 sm:$0xff]  ;;  %v3594_v31 = vsel %vm3553_vm7, 1.0, %v2816_v0 }
 0x181   : > { %1108 = vst [vmem:[#allocation2 + $0x8] sm:$0xff] %v1078_v37  ;;  %v879_v53 = vmin.f32 %v849_v38, 6.0  ;;  %v820_v54 = vadd.f32 %v3303_v25, %v783_v41  ;;  %v840_v55 = vadd.f32 %v3303_v25, %v803_v43  ;;  %v3584_v26 = vsel %vm3530_vm4, 1.0, %v2816_v0  ;;  %v3609_v48 = vld [vmem:[#allocation8 + $0x3] ss:$0 sm:$0xff] }
 0x182   : > { %v670_v42 = vpop.f32.mrf.mxu0  ;;  %1128 = vst [vmem:[#allocation2 + $0xa8] sm:$0xff] %v1098_v49  ;;  %v899_v58 = vmin.f32 %v869_v50, 6.0  ;;  %v750_v59 = vpop.f32.mrf.mxu1  ;;  %v3599_v32 = vsel %vm3563_vm15, 1.0, %v2816_v0 }
 0x183   : > { %v1079_v6 = vmul.f32 %v3343_v39, %v879_v53  ;;  %v850_v8 = vmax.f32 %v820_v54, 0.0  ;;  %v784_v10 = vmul.f32 %v3286_v21, %v670_v42  ;;  %v870_v11 = vmax.f32 %v840_v55, 0.0 }
 0x184   : > { %v2271_v3 = vpop.f32.mrf.mxu0  ;;  %v1099_v14 = vmul.f32 %v2168_v7, %v899_v58  ;;  %v804_v15 = vmul.f32 %v3286_v21, %v750_v59  ;;  %v2311_v17 = vpop.f32.mrf.mxu1  ;;  %v3571_v39 = vsel %vm3455_vm6, 1.0, %v2816_v0  ;;  %v1158_v54 = vmul.f32 %v3578_v18, %v3435_v9 }
 0x185   : > { %1109 = vst [vmem:[#allocation2 + $0x10] sm:$0xff] %v1079_v6  ;;  %v880_v22 = vmin.f32 %v850_v8, 6.0  ;;  %v821_v24 = vadd.f32 %v3303_v25, %v784_v10  ;;  %v900_v7 = vmin.f32 %v870_v11, 6.0  ;;  %v1159_v0 = vmul.f32 %v3578_v18, %v1078_v37  ;;  %v3626_v3 = vld [vmem:[#allocation8 + $0x6] ss:$0 sm:$0xff] }
 0x186   : > { %v673_v28 = vpop.f32.mrf.mxu0  ;;  %1129 = vst [vmem:[#allocation2 + $0xb0] sm:$0xff] %v1099_v14  ;;  %v841_v13 = vadd.f32 %v3303_v25, %v804_v15  ;;  %v753_v29 = vpop.f32.mrf.mxu1 }
 0x187   : > { %v1080_v38 = vmul.f32 %v3348_v40, %v880_v22  ;;  %v851_v41 = vmax.f32 %v821_v24, 0.0  ;;  %v785_v43 = vmul.f32 %v3286_v21, %v673_v28  ;;  %v1100_v47 = vmul.f32 %v3464_v27, %v900_v7 }
 0x188   : > { %v2272_v49 = vpop.f32.mrf.mxu0  ;;  %v871_v50 = vmax.f32 %v841_v13, 0.0  ;;  %v805_v51 = vmul.f32 %v3286_v21, %v753_v29  ;;  %v2312_v53 = vpop.f32.mrf.mxu1  ;;  %v1190_v16 = vld [vmem:[#allocation2 + $0x1] sm:$0xff] }
 0x189   : > { %v1243_v55 = vld [vmem:[#allocation2 + $0x2] sm:$0xff]  ;;  %1110 = vst [vmem:[#allocation2 + $0x18] sm:$0xff] %v1080_v38  ;;  %v881_v40 = vmin.f32 %v851_v41, 6.0  ;;  %v822_v57 = vadd.f32 %v3303_v25, %v785_v43  ;;  %1130 = vst [vmem:[#allocation2 + $0xb8] sm:$0xff] %v1100_v47  ;;  %v1211_v27 = vmul.f32 %v3586_v23, %v1190_v16  ;;  %v1318_v9 = vmul.f32 %v3609_v48, %v1080_v38 }
 0x18a   : > { %v1264_v42 = vmul.f32 %v3589_v30, %v1243_v55  ;;  %v678_v58 = vpop.f32.mrf.mxu0  ;;  %v901_v59 = vmin.f32 %v871_v50, 6.0  ;;  %v842_v63 = vadd.f32 %v3303_v25, %v805_v51  ;;  %v758_v6 = vpop.f32.mrf.mxu1  ;;  %v3621_v37 = vmul.f32 %v3578_v18, %v1080_v38  ;;  %v3628_v14 = vld [vmem:[#allocation2 + $0xa8] sm:$0xff] }
 0x18b   : > { %v1081_v8 = vmul.f32 %v3360_v44, %v881_v40  ;;  %v852_v10 = vmax.f32 %v822_v57, 0.0  ;;  %v786_v11 = vmul.f32 %v3286_v21, %v678_v58  ;;  %v806_v12 = vmul.f32 %v3286_v21, %v758_v6 }
 0x18c   : > { %v2275_v15 = vpop.f32.mrf.mxu0  ;;  %v1101_v17 = vmul.f32 %v3512_v33, %v901_v59  ;;  %v872_v22 = vmax.f32 %v842_v63, 0.0  ;;  %v2315_v24 = vpop.f32.mrf.mxu1  ;;  %v1191_v7 = vld [vmem:[#allocation2 + $0x9] sm:$0xff]  ;;  %v1227_v28 = vadd.f32 %v1211_v27, %v1158_v54  ;;  %v3633_v44 = vmul.f32 %v3626_v3, %v3628_v14 }
 0x18d   : > { %v1244_v13 = vld [vmem:[#allocation2 + $0xa] sm:$0xff]  ;;  %1111 = vst [vmem:[#allocation2 + $0x20] sm:$0xff] %v1081_v8  ;;  %v882_v29 = vmin.f32 %v852_v10, 6.0  ;;  %v823_v38 = vadd.f32 %v3303_v25, %v786_v11  ;;  %v843_v41 = vadd.f32 %v3303_v25, %v806_v12  ;;  %v1212_v43 = vmul.f32 %v3586_v23, %v1191_v7  ;;  %v3645_v12 = vld [vmem:[#allocation8 + $0x7] ss:$0 sm:$0xff] }
 0x18e   : > { %v681_v47 = vpop.f32.mrf.mxu0  ;;  %1131 = vst [vmem:[#allocation2 + $0xc0] sm:$0xff] %v1101_v17  ;;  %v902_v33 = vmin.f32 %v872_v22, 6.0  ;;  %v761_v49 = vpop.f32.mrf.mxu1  ;;  %v1265_v50 = vmul.f32 %v3589_v30, %v1244_v13  ;;  %v1280_v51 = vadd.f32 %v1264_v42, %v1227_v28  ;;  %v1319_v53 = vmul.f32 %v3609_v48, %v1081_v8  ;;  %v3650_v15 = vld [vmem:[#allocation2 + $0xb0] sm:$0xff] }
 0x18f   : > { %v1082_v54 = vmul.f32 %v3365_v45, %v882_v29  ;;  %v853_v16 = vmax.f32 %v823_v38, 0.0  ;;  %v787_v55 = vmul.f32 %v3286_v21, %v681_v47  ;;  %v873_v40 = vmax.f32 %v843_v41, 0.0  ;;  %v3652_v17 = vld [vmem:[#allocation2 + $0xa9] sm:$0xff]  ;;  %v3655_v24 = vld [vmem:[#allocation8 + $0x4] ss:$0 sm:$0xff] }
 0x190   : > { %v2276_v57 = vpop.f32.mrf.mxu0  ;;  %v1102_v27 = vmul.f32 %v3488_v35, %v902_v33  ;;  %v807_v58 = vmul.f32 %v3286_v21, %v761_v49  ;;  %v2316_v59 = vpop.f32.mrf.mxu1  ;;  %v1228_v63 = vadd.f32 %v1212_v43, %v1159_v0  ;;  %v1334_v6 = vadd.f32 %v1318_v9, %v1280_v51  ;;  %v3657_v7 = vld [vmem:[#allocation8 + $0x5] ss:$0 sm:$0xff] }
 0x191   : > { %1112 = vst [vmem:[#allocation2 + $0x28] sm:$0xff] %v1082_v54  ;;  %v883_v10 = vmin.f32 %v853_v16, 6.0  ;;  %v824_v42 = vadd.f32 %v3303_v25, %v787_v55  ;;  %v903_v11 = vmin.f32 %v873_v40, 6.0  ;;  %v3648_v45 = vmul.f32 %v3578_v18, %v1081_v8  ;;  %v3672_v43 = vld [vmem:[#allocation2 + $0xb1] sm:$0xff] }
 0x192   : > { %v686_v35 = vpop.f32.mrf.mxu0  ;;  %1132 = vst [vmem:[#allocation2 + $0xc8] sm:$0xff] %v1102_v27  ;;  %v844_v22 = vadd.f32 %v3303_v25, %v807_v58  ;;  %v766_v0 = vpop.f32.mrf.mxu1  ;;  %v1281_v9 = vadd.f32 %v1265_v50, %v1228_v63  ;;  %v3661_v28 = vmul.f32 %v3626_v3, %v3650_v15  ;;  %v3665_v8 = vmul.f32 %v3645_v12, %v3652_v17 }
 0x193   : > { %v3668_v13 = vmul.f32 %v3370_v46, %v883_v10  ;;  %v854_v29 = vmax.f32 %v824_v42, 0.0  ;;  %v788_v38 = vmul.f32 %v3286_v21, %v686_v35  ;;  %v1103_v41 = vmul.f32 %v3524_v56, %v903_v11 }
 0x194   : > { %v2279_v47 = vpop.f32.mrf.mxu0  ;;  %v874_v33 = vmax.f32 %v844_v22, 0.0  ;;  %v808_v49 = vmul.f32 %v3286_v21, %v766_v0  ;;  %v2319_v50 = vpop.f32.mrf.mxu1  ;;  %v1335_v51 = vadd.f32 %v1319_v53, %v1281_v9  ;;  %v1350_v54 = vld [vmem:[#allocation2 + $0x19] sm:$0xff]  ;;  %v3677_v55 = vmul.f32 %v3645_v12, %v3672_v43 }
 0x195   : > { %v1403_v16 = vld [vmem:[#allocation2 + $0x1a] sm:$0xff]  ;;  %1113 = vst [vmem:[#allocation2 + $0x30] sm:$0xff] %v3668_v13  ;;  %v884_v46 = vmin.f32 %v854_v29, 6.0  ;;  %v825_v40 = vadd.f32 %v3303_v25, %v788_v38  ;;  %1133 = vst [vmem:[#allocation2 + $0xd0] sm:$0xff] %v1103_v41  ;;  %v1371_v56 = vmul.f32 %v3655_v24, %v1350_v54  ;;  %v1478_v63 = vmul.f32 %v3626_v3, %v3668_v13 }
 0x196   : > { %v1424_v57 = vmul.f32 %v3657_v7, %v1403_v16  ;;  %v689_v27 = vpop.f32.mrf.mxu0  ;;  %v904_v58 = vmin.f32 %v874_v33, 6.0  ;;  %v845_v53 = vadd.f32 %v3303_v25, %v808_v49  ;;  %v769_v59 = vpop.f32.mrf.mxu1  ;;  %v1213_v10 = vmul.f32 %v3586_v23, %v1350_v54 }
 0x197   : > { %v3688_v42 = vmul.f32 %v3412_v2, %v884_v46  ;;  %v855_v11 = vmax.f32 %v825_v40, 0.0  ;;  %v789_v35 = vmul.f32 %v3286_v21, %v689_v27  ;;  %v809_v22 = vmul.f32 %v3286_v21, %v769_v59 }
 0x198   : > { %v2280_v0 = vpop.f32.mrf.mxu0  ;;  %v1104_v9 = vmul.f32 %v3542_v61, %v904_v58  ;;  %v875_v29 = vmax.f32 %v845_v53, 0.0  ;;  %v1351_v38 = vld [vmem:[#allocation2 + $0x21] sm:$0xff]  ;;  %v1387_v41 = vadd.f32 %v1371_v56, %v1334_v6  ;;  %v1229_v33 = vadd.f32 %v1213_v10, %v3621_v37  ;;  %v2320_v49 = vpop.f32.mrf.mxu1 }
 0x199   : > { %v1404_v47 = vld [vmem:[#allocation2 + $0x22] sm:$0xff]  ;;  %1114 = vst [vmem:[#allocation2 + $0x38] sm:$0xff] %v3688_v42  ;;  %v885_v50 = vmin.f32 %v855_v11, 6.0  ;;  %v826_v2 = vadd.f32 %v3303_v25, %v789_v35  ;;  %v846_v54 = vadd.f32 %v3303_v25, %v809_v22  ;;  %v1372_v46 = vmul.f32 %v3655_v24, %v1351_v38 }
 0x19a   : > { %v694_v40 = vpop.f32.mrf.mxu0  ;;  %1134 = vst [vmem:[#allocation2 + $0xd8] sm:$0xff] %v1104_v9  ;;  %v905_v27 = vmin.f32 %v875_v29, 6.0  ;;  %v1425_v61 = vmul.f32 %v3657_v7, %v1404_v47  ;;  %v1440_v58 = vadd.f32 %v1424_v57, %v1387_v41  ;;  %v1479_v6 = vmul.f32 %v3626_v3, %v3688_v42 }
 0x19b   : > { %v1085_v37 = vmul.f32 %v3417_v4, %v885_v50  ;;  %v856_v56 = vmax.f32 %v826_v2, 0.0  ;;  %v790_v53 = vmul.f32 %v3286_v21, %v694_v40  ;;  %v876_v59 = vmax.f32 %v846_v54, 0.0  ;;  %v3707_v50 = vld [vmem:[#allocation8 + $0x8] ss:$0 sm:$0xff] }
 0x19c   : > { %v2283_v10 = vpop.f32.mrf.mxu0  ;;  %v1105_v11 = vmul.f32 %v3571_v39, %v905_v27  ;;  %v1388_v35 = vadd.f32 %v1372_v46, %v1335_v51  ;;  %v1494_v22 = vadd.f32 %v1478_v63, %v1440_v58  ;;  %v1214_v0 = vmul.f32 %v3586_v23, %v1351_v38 }
 0x19d   : > { %1115 = vst [vmem:[#allocation2 + $0x40] sm:$0xff] %v1085_v37  ;;  %v886_v9 = vmin.f32 %v856_v56, 6.0  ;;  %v827_v57 = vadd.f32 %v3303_v25, %v790_v53  ;;  %v906_v29 = vmin.f32 %v876_v59, 6.0  ;;  %v1266_v41 = vmul.f32 %v3589_v30, %v1403_v16 }
 0x19e   : > { %v697_v49 = vpop.f32.mrf.mxu0  ;;  %1135 = vst [vmem:[#allocation2 + $0xe0] sm:$0xff] %v1105_v11  ;;  %v1441_v4 = vadd.f32 %v1425_v61, %v1388_v35  ;;  %v1230_v2 = vadd.f32 %v1214_v0, %v3648_v45  ;;  %v1267_v39 = vmul.f32 %v3589_v30, %v1404_v47  ;;  %v1320_v51 = vmul.f32 %v3609_v48, %v3668_v13 }
 0x19f   : > { %v3714_v63 = vmul.f32 %v3422_v5, %v886_v9  ;;  %v857_v38 = vmax.f32 %v827_v57, 0.0  ;;  %v791_v54 = vmul.f32 %v3286_v21, %v697_v49  ;;  %v1106_v16 = vmul.f32 %v3584_v26, %v906_v29 }
 0x1a0   : > { %v2284_v46 = vpop.f32.mrf.mxu0  ;;  %v1495_v40 = vadd.f32 %v1479_v6, %v1441_v4  ;;  %v1510_v27 = vld [vmem:[#allocation2 + $0x31] sm:$0xff]  ;;  %v1282_v58 = vadd.f32 %v1266_v41, %v1229_v33  ;;  %v1283_v37 = vadd.f32 %v1267_v39, %v1230_v2  ;;  %v1321_v45 = vmul.f32 %v3609_v48, %v3688_v42 }
 0x1a1   : > { %v1563_v61 = vld [vmem:[#allocation2 + $0x32] sm:$0xff]  ;;  %1116 = vst [vmem:[#allocation2 + $0x48] sm:$0xff] %v3714_v63  ;;  %v887_v47 = vmin.f32 %v857_v38, 6.0  ;;  %v828_v5 = vadd.f32 %v3303_v25, %v791_v54  ;;  %1136 = vst [vmem:[#allocation2 + $0xe8] sm:$0xff] %v1106_v16  ;;  %v1531_v56 = vmul.f32 %v3645_v12, %v1510_v27  ;;  %v1373_v10 = vmul.f32 %v3655_v24, %v1510_v27  ;;  %v3743_v54 = vld [vmem:[%s4327_s23] ss:$0 sm:$0xff] }
 0x1a2   : > { %v1584_v53 = vmul.f32 %v3707_v50, %v1563_v61  ;;  %v702_v26 = vpop.f32.mrf.mxu0  ;;  %v1336_v59 = vadd.f32 %v1320_v51, %v1282_v58  ;;  %v1337_v6 = vadd.f32 %v1321_v45, %v1283_v37  ;;  %v1426_v33 = vmul.f32 %v3657_v7, %v1563_v61 }
 0x1a3   : > { %v3727_v11 = vmul.f32 %v3451_v20, %v887_v47  ;;  %v858_v35 = vmax.f32 %v828_v5, 0.0  ;;  %v792_v0 = vmul.f32 %v3286_v21, %v702_v26  ;;  %v1547_v9 = vadd.f32 %v1531_v56, %v1494_v22  ;;  %v3752_v56 = vld [vmem:[%s4328_s15] ss:$0 sm:$0xff]  ;;  %s4102_s15 = scalar_lea.hbm %s4332_s24, %s2201_s6 }
 0x1a4   : > { %v2287_v57 = vpop.f32.mrf.mxu0  ;;  %v1511_v29 = vld [vmem:[#allocation2 + $0x39] sm:$0xff]  ;;  %v1389_v49 = vadd.f32 %v1373_v10, %v1336_v59  ;;  %v1480_v4 = vmul.f32 %v3626_v3, %v3714_v63  ;;  %v1162_v2 = vmul.f32 %v3578_v18, %v3668_v13  ;;  %v1163_v39 = vmul.f32 %v3578_v18, %v3688_v42 }
 0x1a5   : > { %v1564_v41 = vld [vmem:[#allocation2 + $0x3a] sm:$0xff]  ;;  %1117 = vst [vmem:[#allocation2 + $0x50] sm:$0xff] %v3727_v11  ;;  %v888_v20 = vmin.f32 %v858_v35, 6.0  ;;  %v829_v51 = vadd.f32 %v3303_v25, %v792_v0  ;;  %v1532_v22 = vmul.f32 %v3645_v12, %v1511_v29  ;;  %v1600_v46 = vadd.f32 %v1584_v53, %v1547_v9 }
 0x1a6   : > { %v1585_v38 = vmul.f32 %v3707_v50, %v1564_v41  ;;  %v705_v16 = vpop.f32.mrf.mxu0  ;;  %v1374_v13 = vmul.f32 %v3655_v24, %v1511_v29  ;;  %v1427_v42 = vmul.f32 %v3657_v7, %v1564_v41  ;;  %v1442_v58 = vadd.f32 %v1426_v33, %v1389_v49 }
 0x1a7   : > { %v1088_v37 = vmul.f32 %v3469_v19, %v888_v20  ;;  %v859_v45 = vmax.f32 %v829_v51, 0.0  ;;  %v793_v47 = vmul.f32 %v3286_v21, %v705_v16  ;;  %v1548_v5 = vadd.f32 %v1532_v22, %v1495_v40 }
 0x1a8   : > { %v2288_v26 = vpop.f32.mrf.mxu0  ;;  %v1623_v59 = vmul.f32 %v3743_v54, %v1600_v46  ;;  %v1390_v53 = vadd.f32 %v1374_v13, %v1337_v6  ;;  %v1481_v10 = vmul.f32 %v3626_v3, %v3727_v11  ;;  %v1496_v35 = vadd.f32 %v1480_v4, %v1442_v58 }
 0x1a9   : > { %1118 = vst [vmem:[#allocation2 + $0x58] sm:$0xff] %v1088_v37  ;;  %v889_v33 = vmin.f32 %v859_v45, 6.0  ;;  %v830_v19 = vadd.f32 %v3303_v25, %v793_v47  ;;  %v1601_v0 = vadd.f32 %v1585_v38, %v1548_v5  ;;  %v1215_v40 = vmul.f32 %v3586_v23, %v1510_v27 }
 0x1aa   : > { %v710_v9 = vpop.f32.mrf.mxu0  ;;  %v1646_v57 = vadd.f32 %v3752_v56, %v1623_v59  ;;  %v1443_v49 = vadd.f32 %v1427_v42, %v1390_v53  ;;  %v1216_v20 = vmul.f32 %v3586_v23, %v1511_v29  ;;  %v1268_v51 = vmul.f32 %v3589_v30, %v1563_v61 }
 0x1ab   : > { %v3763_v6 = vmul.f32 %v3483_v34, %v889_v33  ;;  %v860_v22 = vmax.f32 %v830_v19, 0.0  ;;  %v794_v4 = vmul.f32 %v3286_v21, %v710_v9  ;;  %v1624_v16 = vmul.f32 %v3743_v54, %v1601_v0 }
 0x1ac   : > { %v2291_v46 = vpop.f32.mrf.mxu0  ;;  %v1662_v38 = vmax.f32 %v1646_v57, 0.0  ;;  %v1497_v13 = vadd.f32 %v1481_v10, %v1443_v49  ;;  %v3767_v27 = vld [vmem:[#allocation2 + $0x49] sm:$0xff]  ;;  %v1231_v42 = vadd.f32 %v1215_v40, %v1162_v2  ;;  %v1232_v37 = vadd.f32 %v1216_v20, %v1163_v39 }
 0x1ad   : > { %v3769_v58 = vld [vmem:[#allocation2 + $0x4a] sm:$0xff]  ;;  %1119 = vst [vmem:[#allocation2 + $0x60] sm:$0xff] %v3763_v6  ;;  %v890_v61 = vmin.f32 %v860_v22, 6.0  ;;  %v831_v34 = vadd.f32 %v3303_v25, %v794_v4  ;;  %v1647_v29 = vadd.f32 %v3752_v56, %v1624_v16  ;;  %v1533_v45 = vmul.f32 %v3645_v12, %v3767_v27 }
 0x1ae   : > { %v713_v47 = vpop.f32.mrf.mxu0  ;;  %v1678_v5 = vmin.f32 %v1662_v38, 6.0  ;;  %v1586_v26 = vmul.f32 %v3707_v50, %v3769_v58  ;;  %v1269_v59 = vmul.f32 %v3589_v30, %v1564_v41  ;;  %v1284_v53 = vadd.f32 %v1268_v51, %v1231_v42 }
 0x1af   : > { %v3780_v2 = vmul.f32 %v3517_v52, %v890_v61  ;;  %v861_v39 = vmax.f32 %v831_v34, 0.0  ;;  %v795_v10 = vmul.f32 %v3286_v21, %v713_v47  ;;  %v1663_v33 = vmax.f32 %v1647_v29, 0.0 }
 0x1b0   : > { %v2292_v19 = vpop.f32.mrf.mxu0  ;;  %v3783_v0 = vld [vmem:[#allocation2 + $0x51] sm:$0xff]  ;;  %v1549_v40 = vadd.f32 %v1533_v45, %v1496_v35  ;;  %v1285_v57 = vadd.f32 %v1269_v59, %v1232_v37  ;;  %v1322_v49 = vmul.f32 %v3609_v48, %v3714_v63  ;;  %v1323_v41 = vmul.f32 %v3609_v48, %v3727_v11 }
 0x1b1   : > { %v3785_v9 = vld [vmem:[#allocation2 + $0x52] sm:$0xff]  ;;  %1120 = vst [vmem:[#allocation2 + $0x68] sm:$0xff] %v3780_v2  ;;  %v891_v52 = vmin.f32 %v861_v39, 6.0  ;;  %v832_v20 = vadd.f32 %v3303_v25, %v795_v10  ;;  %v1679_v51 = vmin.f32 %v1663_v33, 6.0  ;;  %v1534_v22 = vmul.f32 %v3645_v12, %v3783_v0 }
 0x1b2   : > { %v718_v4 = vpop.f32.mrf.mxu0  ;;  %v1587_v35 = vmul.f32 %v3707_v50, %v3785_v9  ;;  %v1602_v16 = vadd.f32 %v1586_v26, %v1549_v40  ;;  %v1338_v46 = vadd.f32 %v1322_v49, %v1284_v53  ;;  %v1339_v38 = vadd.f32 %v1323_v41, %v1285_v57 }
 0x1b3   : > { %v1091_v42 = vmul.f32 %v3537_v60, %v891_v52  ;;  %v862_v37 = vmax.f32 %v832_v20, 0.0  ;;  %v796_v61 = vmul.f32 %v3286_v21, %v718_v4  ;;  %v1694_v34 = vpack.c.bf16 %v1679_v51, %v1678_v5 }
 0x1b4   : > { %v2295_v29 = vpop.f32.mrf.mxu0  ;;  %v1550_v45 = vadd.f32 %v1534_v22, %v1497_v13  ;;  %v1625_v47 = vmul.f32 %v3743_v54, %v1602_v16  ;;  %v1375_v59 = vmul.f32 %v3655_v24, %v3767_v27  ;;  %v1376_v39 = vmul.f32 %v3655_v24, %v3783_v0 }
 0x1b5   : > { %1121 = vst [vmem:[#allocation2 + $0x70] sm:$0xff] %v1091_v42  ;;  %v892_v26 = vmin.f32 %v862_v37, 6.0  ;;  %v833_v53 = vadd.f32 %v3303_v25, %v796_v61  ;;  %2337 = vmatprep.mubr.bf16.mxu1 %v1694_v34  ;;  %v1428_v60 = vmul.f32 %v3657_v7, %v3769_v58  ;;  %v1429_v5 = vmul.f32 %v3657_v7, %v3785_v9 }
 0x1b6   : > { %v721_v13 = vpop.f32.mrf.mxu0  ;;  %v1603_v10 = vadd.f32 %v1587_v35, %v1550_v45  ;;  %v1648_v33 = vadd.f32 %v3752_v56, %v1625_v47  ;;  %v1391_v19 = vadd.f32 %v1375_v59, %v1338_v46  ;;  %v1392_v40 = vadd.f32 %v1376_v39, %v1339_v38 }
 0x1b7   : > { %v3811_v57 = vmul.f32 %v3547_v62, %v892_v26  ;;  %v863_v49 = vmax.f32 %v833_v53, 0.0  ;;  %v797_v41 = vmul.f32 %v3286_v21, %v721_v13  ;;  %v1482_v52 = vmul.f32 %v3626_v3, %v3763_v6 }
 0x1b8   : > { %v2296_v20 = vpop.f32.mrf.mxu0  ;;  %v1626_v51 = vmul.f32 %v3743_v54, %v1603_v10  ;;  %v1664_v22 = vmax.f32 %v1648_v33, 0.0  ;;  %v1444_v4 = vadd.f32 %v1428_v60, %v1391_v19  ;;  %v1445_v16 = vadd.f32 %v1429_v5, %v1392_v40  ;;  %v3817_v35 = vld [vmem:[#allocation2 + $0x61] sm:$0xff] }
 0x1b9   : > { %v3819_v42 = vld [vmem:[#allocation2 + $0x62] sm:$0xff]  ;;  %1122 = vst [vmem:[#allocation2 + $0x78] sm:$0xff] %v3811_v57  ;;  %v893_v62 = vmin.f32 %v863_v49, 6.0  ;;  %v834_v46 = vadd.f32 %v3303_v25, %v797_v41  ;;  %v1483_v38 = vmul.f32 %v3626_v3, %v3780_v2  ;;  %v1535_v37 = vmul.f32 %v3645_v12, %v3817_v35 }
 0x1ba   : > { %v726_v61 = vpop.f32.mrf.mxu0  ;;  %v1649_v34 = vadd.f32 %v3752_v56, %v1626_v51  ;;  %v1680_v29 = vmin.f32 %v1664_v22, 6.0  ;;  %v1498_v45 = vadd.f32 %v1482_v52, %v1444_v4  ;;  %v1588_v47 = vmul.f32 %v3707_v50, %v3819_v42 }
 0x1bb   : > { %v3831_v59 = vmul.f32 %v3576_v1, %v893_v62  ;;  %v864_v39 = vmax.f32 %v834_v46, 0.0  ;;  %v798_v26 = vmul.f32 %v3286_v21, %v726_v61  ;;  %v1499_v53 = vadd.f32 %v1483_v38, %v1445_v16 }
 0x1bc   : > { %v2299_v60 = vpop.f32.mrf.mxu0  ;;  %v1665_v5 = vmax.f32 %v1649_v34, 0.0  ;;  %v3834_v13 = vld [vmem:[#allocation2 + $0x69] sm:$0xff]  ;;  %v1551_v10 = vadd.f32 %v1535_v37, %v1498_v45  ;;  %v1164_v19 = vmul.f32 %v3578_v18, %v3714_v63  ;;  %v1165_v40 = vmul.f32 %v3578_v18, %v3727_v11 }
 0x1bd   : > { %v3836_v33 = vld [vmem:[#allocation2 + $0x6a] sm:$0xff]  ;;  %1123 = vst [vmem:[#allocation2 + $0x80] sm:$0xff] %v3831_v59  ;;  %v894_v1 = vmin.f32 %v864_v39, 6.0  ;;  %v835_v49 = vadd.f32 %v3303_v25, %v798_v26  ;;  %v1536_v41 = vmul.f32 %v3645_v12, %v3834_v13  ;;  %v1217_v63 = vmul.f32 %v3586_v23, %v3767_v27 }
 0x1be   : > { %v1589_v52 = vmul.f32 %v3707_v50, %v3836_v33  ;;  %v729_v20 = vpop.f32.mrf.mxu0  ;;  %v1681_v51 = vmin.f32 %v1665_v5, 6.0  ;;  %v1604_v22 = vadd.f32 %v1588_v47, %v1551_v10  ;;  %v1218_v11 = vmul.f32 %v3586_v23, %v3783_v0 }
 0x1bf   : > { %v1094_v4 = vmul.f32 %v3594_v31, %v894_v1  ;;  %v865_v16 = vmax.f32 %v835_v49, 0.0  ;;  %v799_v62 = vmul.f32 %v3286_v21, %v729_v20  ;;  %v1552_v46 = vadd.f32 %v1536_v41, %v1499_v53 }
 0x1c0   : > { %v2300_v38 = vpop.f32.mrf.mxu0  ;;  %v1695_v37 = vpack.c.bf16 %v1681_v51, %v1680_v29  ;;  %v1627_v61 = vmul.f32 %v3743_v54, %v1604_v22  ;;  %v1233_v34 = vadd.f32 %v1217_v63, %v1164_v19  ;;  %v1234_v45 = vadd.f32 %v1218_v11, %v1165_v40 }
 0x1c1   : > { %1124 = vst [vmem:[#allocation2 + $0x88] sm:$0xff] %v1094_v4  ;;  %v895_v47 = vmin.f32 %v865_v16, 6.0  ;;  %v836_v39 = vadd.f32 %v3303_v25, %v799_v62  ;;  %v1605_v27 = vadd.f32 %v1589_v52, %v1552_v46  ;;  %v1270_v0 = vmul.f32 %v3589_v30, %v3769_v58 }
 0x1c2   : > { %2338 = vmatmul.mubr.bf16.vlgmr.msra.gmra.mxu1 %v1695_v37  ;;  %v1650_v31 = vadd.f32 %v3752_v56, %v1627_v61  ;;  %v1271_v21 = vmul.f32 %v3589_v30, %v3785_v9  ;;  %v1324_v29 = vmul.f32 %v3609_v48, %v3763_v6  ;;  %v1325_v26 = vmul.f32 %v3609_v48, %v3780_v2 }
 0x1c3   : > { %v3866_v53 = vmul.f32 %v3599_v32, %v895_v47  ;;  %v866_v25 = vmax.f32 %v836_v39, 0.0  ;;  %v1628_v60 = vmul.f32 %v3743_v54, %v1605_v27  ;;  %v1286_v5 = vadd.f32 %v1270_v0, %v1233_v34 }
 0x1c4   : > { %v1666_v58 = vmax.f32 %v1650_v31, 0.0  ;;  %v1287_v10 = vadd.f32 %v1271_v21, %v1234_v45  ;;  %v1377_v19 = vmul.f32 %v3655_v24, %v3817_v35  ;;  %v1378_v9 = vmul.f32 %v3655_v24, %v3834_v13  ;;  %v3877_v41 = vld [vmem:[#allocation2 + $0x79] sm:$0xff] }
 0x1c5   : > { %1125 = vst [vmem:[#allocation2 + $0x90] sm:$0xff] %v3866_v53  ;;  %v896_v40 = vmin.f32 %v866_v25, 6.0  ;;  %v1651_v1 = vadd.f32 %v3752_v56, %v1628_v60  ;;  %v1340_v49 = vadd.f32 %v1324_v29, %v1286_v5  ;;  %v1430_v32 = vmul.f32 %v3657_v7, %v3819_v42  ;;  %v3879_v52 = vld [vmem:[#allocation2 + $0x7a] sm:$0xff] }
 0x1c6   : > { %v1682_v20 = vmin.f32 %v1666_v58, 6.0  ;;  %v1341_v51 = vadd.f32 %v1325_v26, %v1287_v10  ;;  %v1431_v22 = vmul.f32 %v3657_v7, %v3836_v33  ;;  %v1484_v63 = vmul.f32 %v3626_v3, %v3811_v57 }
 0x1c7   : > { %v3886_v11 = vmul.f32 %v3604_v36, %v896_v40  ;;  %v1667_v4 = vmax.f32 %v1651_v1, 0.0  ;;  %v1393_v16 = vadd.f32 %v1377_v19, %v1340_v49  ;;  %v1485_v62 = vmul.f32 %v3626_v3, %v3831_v59 }
 0x1c8   : > { %v1394_v46 = vadd.f32 %v1378_v9, %v1341_v51  ;;  %v1517_v38 = vld [vmem:[#allocation2 + $0x81] sm:$0xff]  ;;  %v1537_v37 = vmul.f32 %v3645_v12, %v3877_v41  ;;  %v1590_v34 = vmul.f32 %v3707_v50, %v3879_v52  ;;  %v1166_v45 = vmul.f32 %v3578_v18, %v3763_v6 }
 0x1c9   : > { %v1570_v61 = vld [vmem:[#allocation2 + $0x82] sm:$0xff]  ;;  %1126 = vst [vmem:[#allocation2 + $0x98] sm:$0xff] %v3886_v11  ;;  %v1683_v36 = vmin.f32 %v1667_v4, 6.0  ;;  %v1446_v47 = vadd.f32 %v1430_v32, %v1393_v16  ;;  %v1538_v39 = vmul.f32 %v3645_v12, %v1517_v38  ;;  %v1167_v31 = vmul.f32 %v3578_v18, %v3780_v2 }
 0x1ca   : > { %v1591_v27 = vmul.f32 %v3707_v50, %v1570_v61  ;;  %v1447_v0 = vadd.f32 %v1431_v22, %v1394_v46  ;;  %v1219_v21 = vmul.f32 %v3586_v23, %v3817_v35  ;;  %v1220_v29 = vmul.f32 %v3586_v23, %v3834_v13 }
 0x1cb   : > { %v1696_v26 = vpack.c.bf16 %v1683_v36, %v1682_v20  ;;  %v1500_v6 = vadd.f32 %v1484_v63, %v1446_v47  ;;  %v1272_v25 = vmul.f32 %v3589_v30, %v3819_v42  ;;  %v1273_v60 = vmul.f32 %v3589_v30, %v3836_v33 }
 0x1cc   : > { %v1501_v5 = vadd.f32 %v1485_v62, %v1447_v0  ;;  %v1235_v58 = vadd.f32 %v1219_v21, %v1166_v45  ;;  %v1236_v10 = vadd.f32 %v1220_v29, %v1167_v31  ;;  %v1326_v2 = vmul.f32 %v3609_v48, %v3811_v57 }
 0x1cd   : > { %2341 = vmatprep.mubr.bf16.mxu1 %v1696_v26  ;;  %v1553_v19 = vadd.f32 %v1537_v37, %v1500_v6  ;;  %v1327_v35 = vmul.f32 %v3609_v48, %v3831_v59  ;;  %v1379_v13 = vmul.f32 %v3655_v24, %v3877_v41  ;;  %v1380_v9 = vmul.f32 %v3655_v24, %v1517_v38 }
 0x1ce   : > { %v1554_v42 = vadd.f32 %v1538_v39, %v1501_v5  ;;  %v1288_v40 = vadd.f32 %v1272_v25, %v1235_v58  ;;  %v1289_v1 = vadd.f32 %v1273_v60, %v1236_v10  ;;  %v1432_v33 = vmul.f32 %v3657_v7, %v3879_v52 }
 0x1cf   : > { %v1606_v49 = vadd.f32 %v1590_v34, %v1553_v19  ;;  %v1433_v32 = vmul.f32 %v3657_v7, %v1570_v61  ;;  %v1486_v20 = vmul.f32 %v3626_v3, %v3866_v53  ;;  %v1487_v51 = vmul.f32 %v3626_v3, %v3886_v11 }
 0x1d0   : > { %v1607_v22 = vadd.f32 %v1591_v27, %v1554_v42  ;;  %v1342_v63 = vadd.f32 %v1326_v2, %v1288_v40  ;;  %v1343_v4 = vadd.f32 %v1327_v35, %v1289_v1  ;;  %v1518_v16 = vld [vmem:[#allocation2 + $0x91] sm:$0xff]  ;;  %v1519_v62 = vld [vmem:[#allocation2 + $0x99] sm:$0xff]  ;;  %v1168_v37 = vmul.f32 %v3578_v18, %v3811_v57 }
 0x1d1   : > { %v1571_v46 = vld [vmem:[#allocation2 + $0x92] sm:$0xff]  ;;  %v1629_v45 = vmul.f32 %v3743_v54, %v1606_v49  ;;  %v1539_v34 = vmul.f32 %v3645_v12, %v1518_v16  ;;  %v1540_v36 = vmul.f32 %v3645_v12, %v1519_v62  ;;  %v1572_v47 = vld [vmem:[#allocation2 + $0x9a] sm:$0xff]  ;;  %v1169_v57 = vmul.f32 %v3578_v18, %v3831_v59 }
 0x1d2   : > { %v1592_v39 = vmul.f32 %v3707_v50, %v1571_v46  ;;  %v1630_v0 = vmul.f32 %v3743_v54, %v1607_v22  ;;  %v1395_v27 = vadd.f32 %v1379_v13, %v1342_v63  ;;  %v1396_v31 = vadd.f32 %v1380_v9, %v1343_v4  ;;  %v3946_v22 = vld [vmem:[#allocation2 + $0xaa] sm:$0xff] }
 0x1d3   : > { %v1593_v21 = vmul.f32 %v3707_v50, %v1572_v47  ;;  %v1652_v29 = vadd.f32 %v3752_v56, %v1629_v45  ;;  %v1221_v26 = vmul.f32 %v3586_v23, %v3877_v41  ;;  %v1222_v6 = vmul.f32 %v3586_v23, %v1517_v38 }
 0x1d4   : > { %v1653_v25 = vadd.f32 %v3752_v56, %v1630_v0  ;;  %v1448_v60 = vadd.f32 %v1432_v33, %v1395_v27  ;;  %v1449_v5 = vadd.f32 %v1433_v32, %v1396_v31  ;;  %v1274_v58 = vmul.f32 %v3589_v30, %v3879_v52  ;;  %v3951_v27 = vld [vmem:[#allocation2 + $0xb2] sm:$0xff] }
 0x1d5   : > { %v1668_v10 = vmax.f32 %v1652_v29, 0.0  ;;  %v1237_v2 = vadd.f32 %v1221_v26, %v1168_v37  ;;  %v1238_v19 = vadd.f32 %v1222_v6, %v1169_v57  ;;  %v1275_v35 = vmul.f32 %v3589_v30, %v1570_v61 }
 0x1d6   : > { %v1669_v13 = vmax.f32 %v1653_v25, 0.0  ;;  %v1502_v9 = vadd.f32 %v1486_v20, %v1448_v60  ;;  %v1503_v59 = vadd.f32 %v1487_v51, %v1449_v5  ;;  %v1328_v41 = vmul.f32 %v3609_v48, %v3866_v53 }
 0x1d7   : > { %v1684_v42 = vmin.f32 %v1668_v10, 6.0  ;;  %v1290_v38 = vadd.f32 %v1274_v58, %v1237_v2  ;;  %v1291_v40 = vadd.f32 %v1275_v35, %v1238_v19  ;;  %v1329_v1 = vmul.f32 %v3609_v48, %v3886_v11 }
 0x1d8   : > { %v1685_v33 = vmin.f32 %v1669_v13, 6.0  ;;  %v1555_v49 = vadd.f32 %v1539_v34, %v1502_v9  ;;  %v1556_v52 = vadd.f32 %v1540_v36, %v1503_v59  ;;  %v1381_v32 = vmul.f32 %v3655_v24, %v1518_v16 }
 0x1d9   : > { %v1344_v61 = vadd.f32 %v1328_v41, %v1290_v38  ;;  %v1345_v63 = vadd.f32 %v1329_v1, %v1291_v40  ;;  %v1382_v20 = vmul.f32 %v3655_v24, %v1519_v62  ;;  %v1434_v51 = vmul.f32 %v3657_v7, %v1571_v46 }
 0x1da   : > { %v1697_v4 = vpack.c.bf16 %v1685_v33, %v1684_v42  ;;  %v1608_v37 = vadd.f32 %v1592_v39, %v1555_v49  ;;  %v1609_v45 = vadd.f32 %v1593_v21, %v1556_v52  ;;  %v1435_v0 = vmul.f32 %v3657_v7, %v1572_v47  ;;  %v1469_v33 = vld [vmem:[#allocation2 + $0xc0] sm:$0xff]  ;;  %v1470_v49 = vld [vmem:[#allocation2 + $0xc8] sm:$0xff] }
 0x1db   : > { %v1397_v31 = vadd.f32 %v1381_v32, %v1344_v61  ;;  %v1398_v34 = vadd.f32 %v1382_v20, %v1345_v63  ;;  %v1594_v36 = vmul.f32 %v3707_v50, %v3946_v22  ;;  %v1595_v29 = vmul.f32 %v3707_v50, %v3951_v27 }
 0x1dc   : > { %2342 = vmatmul.mubr.bf16.gmra.mxu1 %v1697_v4  ;;  %v1631_v57 = vmul.f32 %v3743_v54, %v1608_v37  ;;  %v1632_v26 = vmul.f32 %v3743_v54, %v1609_v45  ;;  %v1170_v39 = vmul.f32 %v3578_v18, %v3866_v53  ;;  %v1171_v21 = vmul.f32 %v3578_v18, %v3886_v11  ;;  %v1523_v4 = vld [vmem:[#allocation2 + $0xc9] sm:$0xff] }
 0x1dd   : > { %v1450_v6 = vadd.f32 %v1434_v51, %v1397_v31  ;;  %v1451_v25 = vadd.f32 %v1435_v0, %v1398_v34  ;;  %v1223_v60 = vmul.f32 %v3586_v23, %v1518_v16  ;;  %v1224_v5 = vmul.f32 %v3586_v23, %v1519_v62  ;;  %v1522_v51 = vld [vmem:[#allocation2 + $0xc1] sm:$0xff] }
 0x1de   : > { %v1654_v58 = vadd.f32 %v3752_v56, %v1631_v57  ;;  %v1655_v10 = vadd.f32 %v3752_v56, %v1632_v26  ;;  %v1276_v2 = vmul.f32 %v3589_v30, %v1571_v46  ;;  %v1277_v19 = vmul.f32 %v3589_v30, %v1572_v47  ;;  %v1575_v37 = vld [vmem:[#allocation2 + $0xc2] sm:$0xff] }
 0x1df   : > { %v1504_v35 = vadd.f32 %v3633_v44, %v1450_v6  ;;  %v1505_v53 = vadd.f32 %v3661_v28, %v1451_v25  ;;  %v1239_v13 = vadd.f32 %v1223_v60, %v1170_v39  ;;  %v1240_v18 = vadd.f32 %v1224_v5, %v1171_v21  ;;  %v1576_v39 = vld [vmem:[#allocation2 + $0xca] sm:$0xff] }
 0x1e0   : > { %v1670_v11 = vmax.f32 %v1654_v58, 0.0  ;;  %v1671_v9 = vmax.f32 %v1655_v10, 0.0  ;;  %v1330_v16 = vmul.f32 %v3609_v48, %v3628_v14  ;;  %v1331_v23 = vmul.f32 %v3609_v48, %v3650_v15  ;;  %v2534_v6 = vld [vmem:[#allocation8] ss:$0 sm:$0xff]  ;;  %v2535_v5 = vld [vmem:[#allocation8 + $0x1] ss:$0 sm:$0xff] }
 0x1e1   : > { %v1557_v62 = vadd.f32 %v3665_v8, %v1504_v35  ;;  %v1558_v46 = vadd.f32 %v3677_v55, %v1505_v53  ;;  %v1292_v59 = vadd.f32 %v1276_v2, %v1239_v13  ;;  %v1293_v30 = vadd.f32 %v1277_v19, %v1240_v18  ;;  %v2536_v18 = vld [vmem:[#allocation8 + $0x2] ss:$0 sm:$0xff] }
 0x1e2   : > { %v1686_v47 = vmin.f32 %v1670_v11, 6.0  ;;  %v1687_v44 = vmin.f32 %v1671_v9, 6.0  ;;  %v1383_v28 = vmul.f32 %v3655_v24, %v3652_v17  ;;  %v1384_v41 = vmul.f32 %v3655_v24, %v3672_v43 }
 0x1e3   : > { %v1610_v42 = vadd.f32 %v1594_v36, %v1557_v62  ;;  %v1611_v38 = vadd.f32 %v1595_v29, %v1558_v46  ;;  %v1346_v40 = vadd.f32 %v1330_v16, %v1292_v59  ;;  %v1347_v1 = vadd.f32 %v1331_v23, %v1293_v30  ;;  %v2537_v59 = vld [vmem:[#allocation8 + $0x3] ss:$0 sm:$0xff] }
 0x1e4   : > { %v1698_v48 = vpack.c.bf16 %v1687_v44, %v1686_v47  ;;  %v1436_v8 = vmul.f32 %v3657_v7, %v3946_v22  ;;  %v1437_v55 = vmul.f32 %v3657_v7, %v3951_v27  ;;  %v1490_v52 = vmul.f32 %v3626_v3, %v1469_v33 }
 0x1e5   : > { %v1633_v32 = vmul.f32 %v3743_v54, %v1610_v42  ;;  %v1634_v61 = vmul.f32 %v3743_v54, %v1611_v38  ;;  %v1399_v63 = vadd.f32 %v1383_v28, %v1346_v40  ;;  %v1400_v20 = vadd.f32 %v1384_v41, %v1347_v1  ;;  %v1471_v41 = vld [vmem:[#allocation2 + $0xd8] sm:$0xff] }
 0x1e6   : > { %2345 = vmatprep.mubr.bf16.mxu1 %v1698_v48  ;;  %v1491_v45 = vmul.f32 %v3626_v3, %v1470_v49  ;;  %v1543_v0 = vmul.f32 %v3645_v12, %v1522_v51  ;;  %v1544_v31 = vmul.f32 %v3645_v12, %v1523_v4  ;;  %v1596_v34 = vmul.f32 %v3707_v50, %v1575_v37  ;;  %v1472_v48 = vld [vmem:[#allocation2 + $0xe0] sm:$0xff] }
 0x1e7   : > { %v1656_v36 = vadd.f32 %v3752_v56, %v1633_v32  ;;  %v1657_v29 = vadd.f32 %v3752_v56, %v1634_v61  ;;  %v1452_v57 = vadd.f32 %v1436_v8, %v1399_v63  ;;  %v1453_v26 = vadd.f32 %v1437_v55, %v1400_v20  ;;  %v1577_v63 = vld [vmem:[#allocation2 + $0xda] sm:$0xff] }
 0x1e8   : > { %v1597_v21 = vmul.f32 %v3707_v50, %v1576_v39  ;;  %v1172_v25 = vmul.f32 %v2534_v6, %v3628_v14  ;;  %v1173_v60 = vmul.f32 %v2534_v6, %v3650_v15  ;;  %v1225_v58 = vmul.f32 %v2535_v5, %v3652_v17 }
 0x1e9   : > { %v1672_v10 = vmax.f32 %v1656_v36, 0.0  ;;  %v1673_v2 = vmax.f32 %v1657_v29, 0.0  ;;  %v1506_v19 = vadd.f32 %v1490_v52, %v1452_v57  ;;  %v1507_v35 = vadd.f32 %v1491_v45, %v1453_v26 }
 0x1ea   : > { %v1226_v53 = vmul.f32 %v2535_v5, %v3672_v43  ;;  %v1241_v13 = vadd.f32 %v1225_v58, %v1172_v25  ;;  %v1278_v11 = vmul.f32 %v2536_v18, %v3946_v22  ;;  %v1279_v9 = vmul.f32 %v2536_v18, %v3951_v27 }
 0x1eb   : > { %v1688_v16 = vmin.f32 %v1672_v10, 6.0  ;;  %v1689_v23 = vmin.f32 %v1673_v2, 6.0  ;;  %v1559_v14 = vadd.f32 %v1543_v0, %v1506_v19  ;;  %v1560_v62 = vadd.f32 %v1544_v31, %v1507_v35 }
 0x1ec   : > { %v1242_v15 = vadd.f32 %v1226_v53, %v1173_v60  ;;  %v1294_v46 = vadd.f32 %v1278_v11, %v1241_v13  ;;  %v1332_v17 = vmul.f32 %v2537_v59, %v1469_v33  ;;  %v1333_v30 = vmul.f32 %v2537_v59, %v1470_v49  ;;  %v1524_v33 = vld [vmem:[#allocation2 + $0xd9] sm:$0xff] }
 0x1ed   : > { %v1699_v47 = vpack.c.bf16 %v1689_v23, %v1688_v16  ;;  %v1612_v44 = vadd.f32 %v1596_v34, %v1559_v14  ;;  %v1613_v28 = vadd.f32 %v1597_v21, %v1560_v62  ;;  %v1385_v43 = vmul.f32 %v3655_v24, %v1522_v51  ;;  %v1578_v34 = vld [vmem:[#allocation2 + $0xe2] sm:$0xff]  ;;  %v4021_v11 = vld [vmem:[%s4329_s17] ss:$0 sm:$0xff]  ;;  %v1911_v16 = vld [vmem:[%s3120_s30 + $0x10] sm:$0xff]  ;;  %s2677_s17 = sshll.u32 %s2818_s29, 4  ;;  %s2678_s17 = int_to_ptr.vmem [resolvable:$false] %s2677_s17 }
 0x1ee   : > { %v1295_v42 = vadd.f32 %v1279_v9, %v1242_v15  ;;  %v1348_v38 = vadd.f32 %v1332_v17, %v1294_v46  ;;  %v1386_v22 = vmul.f32 %v3655_v24, %v1523_v4  ;;  %v1438_v27 = vmul.f32 %v3657_v7, %v1575_v37  ;;  %v1525_v24 = vld [vmem:[#allocation2 + $0xe1] sm:$0xff]  ;;  %v2538_v4 = vld [vmem:[#allocation8 + $0x6] ss:$0 sm:$0xff]  ;;  %s2679_s13 = scalar_lea.vmem %s2678_s17, 4096  ;;  %p2680_p8 = scmp.lt.s32.totalorder %s4096_s28, %s2678_s17 }
 0x1ef   : > { %2346 = vmatmul.mubr.bf16.gmra.mxu1 %v1699_v47  ;;  %v1635_v40 = vmul.f32 %v3743_v54, %v1612_v44  ;;  %v1636_v1 = vmul.f32 %v3743_v54, %v1613_v28  ;;  %v1439_v49 = vmul.f32 %v3657_v7, %v1576_v39  ;;  %v1492_v52 = vmul.f32 %v3626_v3, %v1471_v41  ;;  %v1909_v15 = vld [vmem:[%s3120_s30] sm:$0xff]  ;;  %v1912_v47 = vld [vmem:[%s3120_s30 + $0x18] sm:$0xff]  ;;  %p2681_p3 = scmp.lt.s32.totalorder %s2679_s13, %s2673_s0 }
 0x1f0   : > { %v1349_v8 = vadd.f32 %v1333_v30, %v1295_v42  ;;  %v1401_v55 = vadd.f32 %v1385_v43, %v1348_v38  ;;  %v1493_v37 = vmul.f32 %v2538_v4, %v1472_v48  ;;  %v1545_v45 = vmul.f32 %v3645_v12, %v1524_v33  ;;  %v1910_v42 = vld [vmem:[%s3120_s30 + $0x8] sm:$0xff]  ;;  %v1915_v48 = vld [vmem:[%s3120_s30 + $0x30] sm:$0xff] }
 0x1f1   : > { %v1658_v32 = vadd.f32 %v3752_v56, %v1635_v40  ;;  %v1659_v61 = vadd.f32 %v3752_v56, %v1636_v1  ;;  %v1546_v7 = vmul.f32 %v3645_v12, %v1525_v24  ;;  %v1598_v3 = vmul.f32 %v3707_v50, %v1577_v63  ;;  %v1916_v63 = vld [vmem:[%s3120_s30 + $0x38] sm:$0xff]  ;;  %p2682_p12 = por %p2681_p3, %p2680_p8 }
 0x1f2   : > { %v1402_v20 = vadd.f32 %v1386_v22, %v1349_v8  ;;  %v1454_v51 = vadd.f32 %v1438_v27, %v1401_v55  ;;  %v1599_v6 = vmul.f32 %v3707_v50, %v1578_v34 }
 0x1f3   : > { %v1674_v0 = vmax.f32 %v1658_v32, 0.0  ;;  %v1675_v31 = vmax.f32 %v1659_v61, 0.0  ;;  %p2683_p0 = pnand %p2682_p12, %p2676_p13 }
 0x1f4   : > { %v1455_v36 = vadd.f32 %v1439_v49, %v1402_v20  ;;  %v1508_v29 = vadd.f32 %v1492_v52, %v1454_v51  ;;  %v1913_v49 = vld [vmem:[%s3120_s30 + $0x20] sm:$0xff] }
 0x1f5   : > { %v1690_v57 = vmin.f32 %v1674_v0, 6.0  ;;  %v1691_v26 = vmin.f32 %v1675_v31, 6.0 }
 0x1f6   : > { %v1509_v39 = vadd.f32 %v1493_v37, %v1455_v36  ;;  %v1561_v21 = vadd.f32 %v1545_v45, %v1508_v29  ;;  %v1914_v45 = vld [vmem:[%s3120_s30 + $0x28] sm:$0xff] }
 0x1f7   : > { %v1700_v25 = vpack.c.bf16 %v1691_v26, %v1690_v57 }
 0x1f8   : > { %v1562_v60 = vadd.f32 %v1546_v7, %v1509_v39  ;;  %v1614_v5 = vadd.f32 %v1598_v3, %v1561_v21  ;;  %v1919_v7 = vld [vmem:[%s3120_s30 + $0x50] sm:$0xff]  ;;  %v1917_v39 = vld [vmem:[%s3120_s30 + $0x40] sm:$0xff] }
 0x1f9   : > { %2349 = vmatprep.mubr.bf16.mxu1 %v1700_v25 }
 0x1fa   : > { %v1615_v58 = vadd.f32 %v1599_v6, %v1562_v60  ;;  %v1637_v10 = vmul.f32 %v3743_v54, %v1614_v5  ;;  %v1920_v5 = vld [vmem:[%s3120_s30 + $0x58] sm:$0xff] }
 0x1fc   : > { %v1638_v2 = vmul.f32 %v3743_v54, %v1615_v58  ;;  %v1660_v12 = vadd.f32 %v3752_v56, %v1637_v10  ;;  %v4026_v54 = vld [vmem:[%s4330_s1] ss:$0 sm:$0xff] }
 0x1fe   : > { %v1661_v19 = vadd.f32 %v3752_v56, %v1638_v2  ;;  %v1676_v35 = vmax.f32 %v1660_v12, 0.0 }
 0x200   : > { %v1677_v53 = vmax.f32 %v1661_v19, 0.0  ;;  %v1692_v13 = vmin.f32 %v1676_v35, 6.0  ;;  %v1918_v19 = vld [vmem:[%s3120_s30 + $0x48] sm:$0xff] }
 0x202   : > { %v1693_v18 = vmin.f32 %v1677_v53, 6.0 }
 0x204   : > { %v1701_v50 = vpack.c.bf16 %v1693_v18, %v1692_v13 }
 0x206   : > { %2350 = vmatmul.mubr.bf16.gmra.mxu1 %v1701_v50 }
 0x282   : > { %v2339_v9 = vpop.f32.mrf.mxu1 }
 0x283   : > { %v1872_v56 = vmul.f32 %v2339_v9, %v4021_v11  ;;  %v1923_v9 = vld [vmem:[%s3120_s30 + $0x70] sm:$0xff] }
 0x284   : > { %v1800_v23 = vpop.f32.mrf.mxu1 }
 0x285   : > { %v1895_v14 = vadd.f32 %v4026_v54, %v1872_v56  ;;  %v1870_v62 = vmul.f32 %v4021_v11, %v1800_v23 }
 0x286   : > { %v2340_v46 = vpop.f32.mrf.mxu1 }
 0x287   : > { %v1927_v59 = vadd.f32 %v1911_v16, %v1895_v14  ;;  %v1893_v17 = vadd.f32 %v4026_v54, %v1870_v62  ;;  %v1873_v30 = vmul.f32 %v2340_v46, %v4021_v11  ;;  %v1921_v14 = vld [vmem:[%s3120_s30 + $0x60] sm:$0xff] }
 0x288   : > { %v1803_v44 = vpop.f32.mrf.mxu1 }
 0x289   : > { %1943 = vst [vmem:[%s4037_s4 + $0x10] sm:$0xff] %v1927_v59  ;;  %v1925_v28 = vadd.f32 %v1909_v15, %v1893_v17  ;;  %v1896_v43 = vadd.f32 %v4026_v54, %v1873_v30  ;;  %v1871_v41 = vmul.f32 %v4021_v11, %v1803_v44  ;;  %v1924_v17 = vld [vmem:[%s3120_s30 + $0x78] sm:$0xff] }
 0x28b   : > { %1941 = vst [vmem:[%s4037_s4] sm:$0xff] %v1925_v28  ;;  %v1928_v38 = vadd.f32 %v1912_v47, %v1896_v43  ;;  %v1894_v22 = vadd.f32 %v4026_v54, %v1871_v41  ;;  %v1922_v43 = vld [vmem:[%s3120_s30 + $0x68] sm:$0xff]  ;;  %s4107_s30 = scalar_lea.sflag [#allocation5], %s459_s25 }
 0x28d   : > { %1944 = vst [vmem:[%s4037_s4 + $0x18] sm:$0xff] %v1928_v38  ;;  %v1926_v27 = vadd.f32 %v1910_v42, %v1894_v22 }
 0x28f   : > { %1942 = vst [vmem:[%s4037_s4 + $0x8] sm:$0xff] %v1926_v27 }
 0x29c   : > { %v2343_v40 = vpop.f32.mrf.mxu1 }
 0x29d   : > { %v1876_v1 = vmul.f32 %v2343_v40, %v4021_v11 }
 0x29e   : > { %v1816_v33 = vpop.f32.mrf.mxu1 }
 0x29f   : > { %v1899_v8 = vadd.f32 %v4026_v54, %v1876_v1  ;;  %v1874_v55 = vmul.f32 %v4021_v11, %v1816_v33 }
 0x2a0   : > { %v2344_v52 = vpop.f32.mrf.mxu1 }
 0x2a1   : > { %v1931_v32 = vadd.f32 %v1915_v48, %v1899_v8  ;;  %v1897_v61 = vadd.f32 %v4026_v54, %v1874_v55  ;;  %v1877_v24 = vmul.f32 %v2344_v52, %v4021_v11 }
 0x2a2   : > { %v1819_v20 = vpop.f32.mrf.mxu1 }
 0x2a3   : > { %1947 = vst [vmem:[%s4037_s4 + $0x30] sm:$0xff] %v1931_v32  ;;  %v1929_v51 = vadd.f32 %v1913_v49, %v1897_v61  ;;  %v1900_v4 = vadd.f32 %v4026_v54, %v1877_v24  ;;  %v1875_v37 = vmul.f32 %v4021_v11, %v1819_v20 }
 0x2a5   : > { %1945 = vst [vmem:[%s4037_s4 + $0x20] sm:$0xff] %v1929_v51  ;;  %v1932_v0 = vadd.f32 %v1916_v63, %v1900_v4  ;;  %v1898_v31 = vadd.f32 %v4026_v54, %v1875_v37 }
 0x2a7   : > { %1948 = vst [vmem:[%s4037_s4 + $0x38] sm:$0xff] %v1932_v0  ;;  %v1930_v34 = vadd.f32 %v1914_v45, %v1898_v31 }
 0x2a9   : > { %1946 = vst [vmem:[%s4037_s4 + $0x28] sm:$0xff] %v1930_v34 }
 0x2af   : > { %v2347_v36 = vpop.f32.mrf.mxu1 }
 0x2b0   : > { %v1880_v29 = vmul.f32 %v2347_v36, %v4021_v11 }
 0x2b1   : > { %v1832_v3 = vpop.f32.mrf.mxu1 }
 0x2b2   : > { %v1903_v57 = vadd.f32 %v4026_v54, %v1880_v29  ;;  %v1878_v26 = vmul.f32 %v4021_v11, %v1832_v3 }
 0x2b3   : > { %v2348_v21 = vpop.f32.mrf.mxu1 }
 0x2b4   : > { %v1935_v6 = vadd.f32 %v1919_v7, %v1903_v57  ;;  %v1901_v25 = vadd.f32 %v4026_v54, %v1878_v26  ;;  %v1881_v60 = vmul.f32 %v2348_v21, %v4021_v11 }
 0x2b5   : > { %v1835_v58 = vpop.f32.mrf.mxu1 }
 0x2b6   : > { %1951 = vst [vmem:[%s4037_s4 + $0x50] sm:$0xff] %v1935_v6  ;;  %v1933_v10 = vadd.f32 %v1917_v39, %v1901_v25  ;;  %v1904_v2 = vadd.f32 %v4026_v54, %v1881_v60  ;;  %v1879_v12 = vmul.f32 %v4021_v11, %v1835_v58 }
 0x2b8   : > { %1949 = vst [vmem:[%s4037_s4 + $0x40] sm:$0xff] %v1933_v10  ;;  %v1936_v35 = vadd.f32 %v1920_v5, %v1904_v2  ;;  %v1902_v53 = vadd.f32 %v4026_v54, %v1879_v12 }
 0x2ba   : > { %1952 = vst [vmem:[%s4037_s4 + $0x58] sm:$0xff] %v1936_v35  ;;  %v1934_v13 = vadd.f32 %v1918_v19, %v1902_v53 }
 0x2bc   : > { %1950 = vst [vmem:[%s4037_s4 + $0x48] sm:$0xff] %v1934_v13 }
 0x2c6   : > { %v2351_v18 = vpop.f32.mrf.mxu1 }
 0x2c7   : > { %v1884_v50 = vmul.f32 %v2351_v18, %v4021_v11 }
 0x2c8   : > { %v1848_v56 = vpop.f32.mrf.mxu1 }
 0x2c9   : > { %v1907_v16 = vadd.f32 %v4026_v54, %v1884_v50  ;;  %v1882_v23 = vmul.f32 %v4021_v11, %v1848_v56 }
 0x2ca   : > { %v2352_v62 = vpop.f32.mrf.mxu1 }
 0x2cb   : > { %v1939_v15 = vadd.f32 %v1923_v9, %v1907_v16  ;;  %v1905_v46 = vadd.f32 %v4026_v54, %v1882_v23  ;;  %v1885_v59 = vmul.f32 %v2352_v62, %v4021_v11 }
 0x2cc   : > { %v1851_v30 = vpop.f32.mrf.mxu1 }
 0x2cd   : > { %1955 = vst [vmem:[%s4037_s4 + $0x70] sm:$0xff] %v1939_v15  ;;  %v1937_v47 = vadd.f32 %v1921_v14, %v1905_v46  ;;  %v1908_v44 = vadd.f32 %v4026_v54, %v1885_v59  ;;  %v1883_v28 = vmul.f32 %v4021_v11, %v1851_v30 }
 0x2cf   : > { %1953 = vst [vmem:[%s4037_s4 + $0x60] sm:$0xff] %v1937_v47  ;;  %v1940_v41 = vadd.f32 %v1924_v17, %v1908_v44  ;;  %v1906_v42 = vadd.f32 %v4026_v54, %v1883_v28 }
 0x2d1   : > { %1956 = vst [vmem:[%s4037_s4 + $0x78] sm:$0xff] %v1940_v41  ;;  %v1938_v38 = vadd.f32 %v1922_v43, %v1906_v42 }
 0x2d3   : > { %1954 = vst [vmem:[%s4037_s4 + $0x68] sm:$0xff] %v1938_v38 }
 0x2d4   : > { %2686 = shalt.err (!%p2683_p0)
}
 0x2d5   : > { %s2687_s25 = scalar_lea.hbm %s4102_s15, 2048  ;;  %s2691_s4 = scalar_lea.hbm %s4333_s12, 8192 }
 0x2d6   : > { %p2688_p7 = scmp.ne.s32.totalorder %s4102_s15, %s2687_s25  ;;  %p2692_p10 = scmp.lt.s32.totalorder %s4102_s15, %s4333_s12 }
 0x2d7   : > { %p2693_p5 = scmp.lt.s32.totalorder %s2691_s4, %s2687_s25 }
 0x2d8   : > { %p2689_p9 = pnand %p2688_p7, %p4334_p6 }
 0x2d9   : > { %p2694_p1 = por %p2693_p5, %p2692_p10 }
 0x2da   : > { %p2690_p2 = pneg %p2689_p9 }
 0x2dc   : > { %p2695_p4 = pnand %p2694_p1, %p2690_p2 }
 0x2de   : > { %2698 = shalt.err (!%p2695_p4)
}
 0x2df   : > { %s2819_s3 = smov 128   ;;  %s2820_s16 = smov 8  }
 0x2e0   : > { %2388 = dma.vmem_to_hbm [thread:$0]  (%p4334_p6), %s4096_s28, 2048, %s4102_s15, %s4107_s30, %s2819_s3, %s2819_s3, %s2820_s16  }
 0x2e1 PF: > { %s4335_s6 = sld [smem:[#allocation18_spill]]  ;;  %p2418_p11 = scmp.ge.s32.totalorder %s2805_s27, 2 }
 0x2e2   : > { %s4336_s11 = sld [smem:[#allocation23_spill]] }
 0x2e7   : > { %s1989_s23 = sand.u32 1, %s4335_s6  }
 0x2e8   : > { %p4337_p13 = scmp.ne.s32.totalorder %s4336_s11, 0  ;;  %s1990_s24 = scalar_lea.sflag [#allocation5], %s1989_s23 }
 0x2ea   : > { %p2408_p8 = pnand %p2418_p11, %p4337_p13 }
 0x2ec   : > { %p2409_p3 = pneg %p2408_p8 }
 0x2ee   : > { %2760 = dma.done.wait (%p2409_p3), %s1990_s24, 2048  }
 0x2ef   : > { %2762 = vsyncadd (%p2409_p3), %s1990_s24, 4294965248  ;;  %s29_s27 = sadd.s32 1, %s2805_s27   ;;  %s4338_s23 = sld [smem:[#allocation21_spill]] }
 0x2f0   : > { %p26_p12 = scmp.ge.s32.totalorder %s29_s27, 6   ;;  %s4339_s25 = sld [smem:[#allocation24_spill]] }
 0x2f1   : > { %s4340_s17 = smov %s2769_s18  ;;  %s4341_s18 = smov %s2773_s19 }
 0x2f2   : > { %s4342_s19 = smov %s3077_s20  ;;  %s4343_s20 = smov %s2781_s21 }
 0x2f3   : > { %s4344_s21 = smov %s2785_s22  ;;  %s4345_s22 = smov %s3074_s7 }
 0x2f4   : > { %s4346_s24 = smov %s2801_s26  ;;  %s4347_s26 = smov %s4353_s5 }
 0x2f5   :  { %28 = sbr.rel (!%p26_p12) target bundleno = 23 (0x17), region = 135 }
 0x2fa   :  { %1995 = vsyncpa [#allocation4], 1 }
 0x2fb   :  { %1997 = vsyncpa [#allocation4 + $0x1], 1 }
 0x2fc   :  { %1998 = vsyncpa [#allocation7], 1 }
 0x2fd   :  { %1999 = vsyncpa [#allocation10], 1 }
 0x2fe   :  { %2000 = vsyncpa [#allocation5], 1 }
 0x2ff   :  { %2002 = vsyncpa [#allocation5 + $0x1], 1 }

</bundles_post_ra>
